<compile_context>
chip_gen: v6e
topology: v6e:2x2x1
jax: 0.10.0
libtpu: 0.0.40
codegen_flags: <defaults>
</compile_context>

<pallas_src>
import numpy as np
import jax
import jax.numpy as jnp
from jax.experimental import pallas as pl
from jax.experimental.pallas import tpu as pltpu


# ------------------------------ fused kernel -------------------------------

def _cnn_fused_kernel(x_ref, w1_ref, b1_ref, p1_ref, s1_ref,
                      w2_ref, b2_ref, p2_ref, s2_ref,
                      wfc1_ref, bfc1_ref, wfc2_ref, bfc2_ref, wfc3_ref, bfc3_ref,
                      o_ref, pool1_ref, pool2_ref):
    f32 = jnp.float32

    # ---- conv1 + bias + relu: 5 banded matmuls over kh-shifted row slabs of the
    # [32, W*C=96] input -> [28, OW*OC = 28*6 = 168] ----
    acc1 = jnp.dot(x_ref[0, 0:28, :], w1_ref[0], preferred_element_type=f32)
    for kh in range(1, 5):
        acc1 = acc1 + jnp.dot(x_ref[0, kh:kh + 28, :], w1_ref[kh],
                              preferred_element_type=f32)
    a1 = jnp.maximum(acc1 + b1_ref[...], 0.0)                                # [28, 168]

    # ---- maxpool1 2x2: row pairs via left selection matmuls, ow pairs via right
    # selection matmuls, elementwise max in between ----
    r1 = jnp.maximum(jnp.dot(p1_ref[0], a1, preferred_element_type=f32),
                     jnp.dot(p1_ref[1], a1, preferred_element_type=f32))     # [14, 168]
    pool1_ref[...] = jnp.maximum(
        jnp.dot(r1, s1_ref[0], preferred_element_type=f32),
        jnp.dot(r1, s1_ref[1], preferred_element_type=f32))                  # [14, 84]

    # ---- conv2 + bias + relu -> [10, 10*16 = 160] ----
    acc2 = jnp.dot(pool1_ref[0:10, :], w2_ref[0], preferred_element_type=f32)
    for kh in range(1, 5):
        acc2 = acc2 + jnp.dot(pool1_ref[kh:kh + 10, :], w2_ref[kh],
                              preferred_element_type=f32)
    a2 = jnp.maximum(acc2 + b2_ref[...], 0.0)                                # [10, 160]

    # ---- maxpool2 2x2 -> [5, 5*16 = 80] ----
    r2 = jnp.maximum(jnp.dot(p2_ref[0], a2, preferred_element_type=f32),
                     jnp.dot(p2_ref[1], a2, preferred_element_type=f32))     # [5, 160]
    pool2_ref[...] = jnp.maximum(
        jnp.dot(r2, s2_ref[0], preferred_element_type=f32),
        jnp.dot(r2, s2_ref[1], preferred_element_type=f32))                  # [5, 80]

    # ---- fc1 + relu: torch.flatten(x,1)'s (C,H,W) order is folded into the
    # permuted weight stack wfc1[h] built at setup; N padded 120 -> 128 lanes ----
    h = jnp.dot(pool2_ref[0:1, :], wfc1_ref[0], preferred_element_type=f32)
    for r in range(1, 5):
        h = h + jnp.dot(pool2_ref[r:r + 1, :], wfc1_ref[r],
                        preferred_element_type=f32)
    h = jnp.maximum(h + bfc1_ref[...], 0.0)                                  # [1, 128]

    # ---- fc2 + relu, fc3 (N padded to 128 lanes; padded rows/cols are zero) ----
    h = jnp.maximum(jnp.dot(h, wfc2_ref[...], preferred_element_type=f32)
                    + bfc2_ref[...], 0.0)                                    # [1, 128]
    o_ref[0] = jnp.dot(h, wfc3_ref[...], preferred_element_type=f32) + bfc3_ref[...]


# ------------------------- pallas_call wrapper ------------------------------

_KP_ORDER = ("w1", "b1", "p1", "s1", "w2", "b2", "p2", "s2",
             "wfc1", "bfc1", "wfc2", "bfc2", "wfc3", "bfc3")


def _fused_forward(kp, x2d):
    B = x2d.shape[0]
    weights = [kp[k] for k in _KP_ORDER]

    def full_spec(arr):
        n = arr.ndim
        return pl.BlockSpec(arr.shape, lambda b: (0,) * n)   # resident, never re-DMAd

    in_specs = ([pl.BlockSpec((1, 32, 96), lambda b: (b, 0, 0))]
                + [full_spec(w) for w in weights])

    out = pl.pallas_call(
        _cnn_fused_kernel,
        out_shape=jax.ShapeDtypeStruct((B, 1, 128), jnp.float32),
        grid_spec=pltpu.PrefetchScalarGridSpec(
            num_scalar_prefetch=0,
            grid=(B,),
            in_specs=in_specs,
            out_specs=pl.BlockSpec((1, 1, 128), lambda b: (b, 0, 0)),
            scratch_shapes=[pltpu.VMEM((14, 84), jnp.float32),   # pool1
                            pltpu.VMEM((5, 80), jnp.float32)]),  # pool2
        compiler_params=pltpu.CompilerParams(
            dimension_semantics=("parallel",)),
    )(x2d, *weights)
    return out.reshape(B, 128)[:, :10]


@jax.jit
def cnn_sample_forward(kparams, x_nchw):
    B = x_nchw.shape[0]
    # NCHW -> NHWC -> [B, H, W*C]: one tiny transpose of the raw input only;
    # all inter-layer activations stay inside the fused kernel.
    x = jnp.transpose(x_nchw.astype(jnp.float32), (0, 2, 3, 1)).reshape(B, 32, 96)
    return _fused_forward(kparams, x)


# ------------------------------ parameters ----------------------------------

def init_params(key):
    def uniform(k, shape, fan_in):
        bound = 1.0 / np.sqrt(float(fan_in))
        return jax.random.uniform(k, shape, jnp.float32, -bound, bound)

    ks = jax.random.split(key, 10)
    return {
        "conv1_w": uniform(ks[0], (6, 3, 5, 5), 3 * 5 * 5),
        "conv1_b": uniform(ks[1], (6,), 3 * 5 * 5),
        "conv2_w": uniform(ks[2], (16, 6, 5, 5), 6 * 5 * 5),
        "conv2_b": uniform(ks[3], (16,), 6 * 5 * 5),
        "fc1_w": uniform(ks[4], (400, 120), 400),   # stored as [in, out]
        "fc1_b": uniform(ks[5], (120,), 400),
        "fc2_w": uniform(ks[6], (120, 84), 120),
        "fc2_b": uniform(ks[7], (84,), 120),
        "fc3_w": uniform(ks[8], (84, 10), 84),
        "fc3_b": uniform(ks[9], (10,), 84),
    }


def _band_conv_weights(w_oihw, in_w, out_w, ic_n, oc_n, k):
    """Stack of k 'Toeplitz' matrices W[kh] of shape [in_w*ic_n, out_w*oc_n] with
    W[kh][w*ic_n+ic, ow*oc_n+oc] = w_oihw[oc, ic, kh, w-ow] for 0 <= w-ow < k,
    so a valid conv becomes out[oh] = sum_kh x[oh+kh, :] @ W[kh] on [H, W*C]."""
    ow = np.arange(out_w)[:, None, None, None]
    kw = np.arange(k)[None, :, None, None]
    ic = np.arange(ic_n)[None, None, :, None]
    oc = np.arange(oc_n)[None, None, None, :]
    shape = (out_w, k, ic_n, oc_n)
    rows = np.broadcast_to((ow + kw) * ic_n + ic, shape).reshape(-1)
    cols = np.broadcast_to(ow * oc_n + oc, shape).reshape(-1)
    wt = jnp.transpose(w_oihw.astype(jnp.float32), (2, 3, 1, 0))   # [kh, kw, ic, oc]
    vals = jnp.broadcast_to(wt[:, None], (k,) + shape).reshape(k, -1)
    W = jnp.zeros((k, in_w * ic_n, out_w * oc_n), jnp.float32)
    return W.at[:, rows, cols].set(vals)


def _pool_row_sel(out_h):
    P = np.zeros((2, out_h, 2 * out_h), np.float32)
    i = np.arange(out_h)
    P[0, i, 2 * i] = 1.0
    P[1, i, 2 * i + 1] = 1.0
    return jnp.asarray(P)


def _pool_col_sel(out_w, c):
    S = np.zeros((2, 2 * out_w * c, out_w * c), np.float32)
    j = np.arange(out_w)[:, None]
    cc = np.arange(c)[None, :]
    S[0, (2 * j) * c + cc, j * c + cc] = 1.0
    S[1, (2 * j + 1) * c + cc, j * c + cc] = 1.0
    return jnp.asarray(S)


def build_kernel_params(p):
    """One-time derivation of kernel-layout weights (band conv weights, pooling
    selection matrices, permuted/padded FC weights). Done outside the hot path."""
    f32 = jnp.float32
    kp = {}
    kp["w1"] = _band_conv_weights(p["conv1_w"], 32, 28, 3, 6, 5)     # [5, 96, 168]
    kp["b1"] = jnp.tile(p["conv1_b"].astype(f32), 28).reshape(1, 168)
    kp["w2"] = _band_conv_weights(p["conv2_w"], 14, 10, 6, 16, 5)    # [5, 84, 160]
    kp["b2"] = jnp.tile(p["conv2_b"].astype(f32), 10).reshape(1, 160)
    kp["p1"] = _pool_row_sel(14)        # [2, 14, 28]
    kp["s1"] = _pool_col_sel(14, 6)     # [2, 168, 84]
    kp["p2"] = _pool_row_sel(5)         # [2, 5, 10]
    kp["s2"] = _pool_col_sel(5, 16)     # [2, 160, 80]

    # fc1: fold torch.flatten's (C,H,W) order into a [h, w*16+c, n] weight stack.
    wfc1 = p["fc1_w"].astype(f32).reshape(16, 5, 5, 120)             # [c, h, w, n]
    wfc1 = jnp.transpose(wfc1, (1, 2, 0, 3)).reshape(5, 80, 120)     # [h, w*16+c, n]
    kp["wfc1"] = jnp.pad(wfc1, ((0, 0), (0, 0), (0, 8)))             # N 120 -> 128
    kp["bfc1"] = jnp.pad(p["fc1_b"].astype(f32), (0, 8)).reshape(1, 128)

    kp["wfc2"] = jnp.pad(p["fc2_w"].astype(f32), ((0, 8), (0, 44)))      # [128, 128]
    kp["bfc2"] = jnp.pad(p["fc2_b"].astype(f32), (0, 44)).reshape(1, 128)
    kp["wfc3"] = jnp.pad(p["fc3_w"].astype(f32), ((0, 44), (0, 118)))    # [128, 128]
    kp["bfc3"] = jnp.pad(p["fc3_b"].astype(f32), (0, 118)).reshape(1, 128)
    return kp


# --------------------------------- main --------------------------------------

if __name__ == "__main__":
    key = jax.random.PRNGKey(0)
    pkey, xkey = jax.random.split(key)
    params = init_params(pkey)
    kparams = build_kernel_params(params)

    # Input implied by the 16*5*5 flatten: 3x32x32 images (NCHW), batch=2.
    x = jax.random.normal(xkey, (2, 3, 32, 32), dtype=jnp.float32)

    out = cnn_sample_forward(kparams, x)
    jax.block_until_ready(out)
    assert out.shape == (2, 10), out.shape
    print("KERNEL_OK")
</pallas_src>

<mosaic_0001>
module attributes {stable_mosaic.version = 11 : i64} {
  func.func @_cnn_fused_kernel(%arg0: i32, %arg1: memref<1x32x96xf32, #tpu.memory_space<vmem>>, %arg2: memref<5x96x168xf32, #tpu.memory_space<vmem>>, %arg3: memref<1x168xf32, #tpu.memory_space<vmem>>, %arg4: memref<2x14x28xf32, #tpu.memory_space<vmem>>, %arg5: memref<2x168x84xf32, #tpu.memory_space<vmem>>, %arg6: memref<5x84x160xf32, #tpu.memory_space<vmem>>, %arg7: memref<1x160xf32, #tpu.memory_space<vmem>>, %arg8: memref<2x5x10xf32, #tpu.memory_space<vmem>>, %arg9: memref<2x160x80xf32, #tpu.memory_space<vmem>>, %arg10: memref<5x80x128xf32, #tpu.memory_space<vmem>>, %arg11: memref<1x128xf32, #tpu.memory_space<vmem>>, %arg12: memref<128x128xf32, #tpu.memory_space<vmem>>, %arg13: memref<1x128xf32, #tpu.memory_space<vmem>>, %arg14: memref<128x128xf32, #tpu.memory_space<vmem>>, %arg15: memref<1x128xf32, #tpu.memory_space<vmem>>, %arg16: memref<1x1x128xf32, #tpu.memory_space<vmem>>, %arg17: memref<14x84xf32, #tpu.memory_space<vmem>>, %arg18: memref<5x80xf32, #tpu.memory_space<vmem>>) attributes {dimension_semantics = [#tpu.dimension_semantics<parallel>], iteration_bounds = array<i64: 2>, scalar_prefetch = 0 : i64, scratch_operands = 2 : i64, tpu.core_type = #tpu.core_type<tc>, window_params = [{transform_indices = @transform_0, window_bounds = array<i64: 1, 32, 96>}, {pipeline_mode = #tpu.pipeline_mode<synchronous>, transform_indices = @transform_1, window_bounds = array<i64: 5, 96, 168>}, {pipeline_mode = #tpu.pipeline_mode<synchronous>, transform_indices = @transform_2, window_bounds = array<i64: 1, 168>}, {pipeline_mode = #tpu.pipeline_mode<synchronous>, transform_indices = @transform_3, window_bounds = array<i64: 2, 14, 28>}, {pipeline_mode = #tpu.pipeline_mode<synchronous>, transform_indices = @transform_4, window_bounds = array<i64: 2, 168, 84>}, {pipeline_mode = #tpu.pipeline_mode<synchronous>, transform_indices = @transform_5, window_bounds = array<i64: 5, 84, 160>}, {pipeline_mode = #tpu.pipeline_mode<synchronous>, transform_indices = @transform_6, window_bounds = array<i64: 1, 160>}, {pipeline_mode = #tpu.pipeline_mode<synchronous>, transform_indices = @transform_7, window_bounds = array<i64: 2, 5, 10>}, {pipeline_mode = #tpu.pipeline_mode<synchronous>, transform_indices = @transform_8, window_bounds = array<i64: 2, 160, 80>}, {pipeline_mode = #tpu.pipeline_mode<synchronous>, transform_indices = @transform_9, window_bounds = array<i64: 5, 80, 128>}, {pipeline_mode = #tpu.pipeline_mode<synchronous>, transform_indices = @transform_10, window_bounds = array<i64: 1, 128>}, {pipeline_mode = #tpu.pipeline_mode<synchronous>, transform_indices = @transform_11, window_bounds = array<i64: 128, 128>}, {pipeline_mode = #tpu.pipeline_mode<synchronous>, transform_indices = @transform_12, window_bounds = array<i64: 1, 128>}, {pipeline_mode = #tpu.pipeline_mode<synchronous>, transform_indices = @transform_13, window_bounds = array<i64: 128, 128>}, {pipeline_mode = #tpu.pipeline_mode<synchronous>, transform_indices = @transform_14, window_bounds = array<i64: 1, 128>}, {transform_indices = @transform_15, window_bounds = array<i64: 1, 1, 128>}]} {
    %c0 = arith.constant 0 : index
    %c0_0 = arith.constant 0 : index
    %c0_1 = arith.constant 0 : index
    %0 = vector.load %arg1[%c0, %c0_0, %c0_1] : memref<1x32x96xf32, #tpu.memory_space<vmem>>, vector<1x28x96xf32>
    %1 = vector.shape_cast %0 : vector<1x28x96xf32> to vector<28x96xf32>
    %c0_2 = arith.constant 0 : index
    %c0_3 = arith.constant 0 : index
    %c0_4 = arith.constant 0 : index
    %2 = vector.load %arg2[%c0_2, %c0_3, %c0_4] : memref<5x96x168xf32, #tpu.memory_space<vmem>>, vector<1x96x168xf32>
    %3 = vector.shape_cast %2 : vector<1x96x168xf32> to vector<96x168xf32>
    %cst = arith.constant dense<0.000000e+00> : vector<28x168xf32>
    %4 = tpu.matmul %1, %3, %cst {dimension_numbers = #tpu.dot_dimension_numbers<[1], [0], [0], [1], [0, 0, 1, 1], [], []>} : vector<28x96xf32>, vector<96x168xf32>, vector<28x168xf32> -> vector<28x168xf32>
    %c0_5 = arith.constant 0 : index
    %c1 = arith.constant 1 : index
    %c0_6 = arith.constant 0 : index
    %5 = vector.load %arg1[%c0_5, %c1, %c0_6] : memref<1x32x96xf32, #tpu.memory_space<vmem>>, vector<1x28x96xf32>
    %6 = vector.shape_cast %5 : vector<1x28x96xf32> to vector<28x96xf32>
    %c1_7 = arith.constant 1 : index
    %c0_8 = arith.constant 0 : index
    %c0_9 = arith.constant 0 : index
    %7 = vector.load %arg2[%c1_7, %c0_8, %c0_9] : memref<5x96x168xf32, #tpu.memory_space<vmem>>, vector<1x96x168xf32>
    %8 = vector.shape_cast %7 : vector<1x96x168xf32> to vector<96x168xf32>
    %cst_10 = arith.constant dense<0.000000e+00> : vector<28x168xf32>
    %9 = tpu.matmul %6, %8, %cst_10 {dimension_numbers = #tpu.dot_dimension_numbers<[1], [0], [0], [1], [0, 0, 1, 1], [], []>} : vector<28x96xf32>, vector<96x168xf32>, vector<28x168xf32> -> vector<28x168xf32>
    %10 = arith.addf %4, %9 : vector<28x168xf32>
    %c0_11 = arith.constant 0 : index
    %c2 = arith.constant 2 : index
    %c0_12 = arith.constant 0 : index
    %11 = vector.load %arg1[%c0_11, %c2, %c0_12] : memref<1x32x96xf32, #tpu.memory_space<vmem>>, vector<1x28x96xf32>
    %12 = vector.shape_cast %11 : vector<1x28x96xf32> to vector<28x96xf32>
    %c2_13 = arith.constant 2 : index
    %c0_14 = arith.constant 0 : index
    %c0_15 = arith.constant 0 : index
    %13 = vector.load %arg2[%c2_13, %c0_14, %c0_15] : memref<5x96x168xf32, #tpu.memory_space<vmem>>, vector<1x96x168xf32>
    %14 = vector.shape_cast %13 : vector<1x96x168xf32> to vector<96x168xf32>
    %cst_16 = arith.constant dense<0.000000e+00> : vector<28x168xf32>
    %15 = tpu.matmul %12, %14, %cst_16 {dimension_numbers = #tpu.dot_dimension_numbers<[1], [0], [0], [1], [0, 0, 1, 1], [], []>} : vector<28x96xf32>, vector<96x168xf32>, vector<28x168xf32> -> vector<28x168xf32>
    %16 = arith.addf %10, %15 : vector<28x168xf32>
    %c0_17 = arith.constant 0 : index
    %c3 = arith.constant 3 : index
    %c0_18 = arith.constant 0 : index
    %17 = vector.load %arg1[%c0_17, %c3, %c0_18] : memref<1x32x96xf32, #tpu.memory_space<vmem>>, vector<1x28x96xf32>
    %18 = vector.shape_cast %17 : vector<1x28x96xf32> to vector<28x96xf32>
    %c3_19 = arith.constant 3 : index
    %c0_20 = arith.constant 0 : index
    %c0_21 = arith.constant 0 : index
    %19 = vector.load %arg2[%c3_19, %c0_20, %c0_21] : memref<5x96x168xf32, #tpu.memory_space<vmem>>, vector<1x96x168xf32>
    %20 = vector.shape_cast %19 : vector<1x96x168xf32> to vector<96x168xf32>
    %cst_22 = arith.constant dense<0.000000e+00> : vector<28x168xf32>
    %21 = tpu.matmul %18, %20, %cst_22 {dimension_numbers = #tpu.dot_dimension_numbers<[1], [0], [0], [1], [0, 0, 1, 1], [], []>} : vector<28x96xf32>, vector<96x168xf32>, vector<28x168xf32> -> vector<28x168xf32>
    %22 = arith.addf %16, %21 : vector<28x168xf32>
    %c0_23 = arith.constant 0 : index
    %c4 = arith.constant 4 : index
    %c0_24 = arith.constant 0 : index
    %23 = vector.load %arg1[%c0_23, %c4, %c0_24] : memref<1x32x96xf32, #tpu.memory_space<vmem>>, vector<1x28x96xf32>
    %24 = vector.shape_cast %23 : vector<1x28x96xf32> to vector<28x96xf32>
    %c4_25 = arith.constant 4 : index
    %c0_26 = arith.constant 0 : index
    %c0_27 = arith.constant 0 : index
    %25 = vector.load %arg2[%c4_25, %c0_26, %c0_27] : memref<5x96x168xf32, #tpu.memory_space<vmem>>, vector<1x96x168xf32>
    %26 = vector.shape_cast %25 : vector<1x96x168xf32> to vector<96x168xf32>
    %cst_28 = arith.constant dense<0.000000e+00> : vector<28x168xf32>
    %27 = tpu.matmul %24, %26, %cst_28 {dimension_numbers = #tpu.dot_dimension_numbers<[1], [0], [0], [1], [0, 0, 1, 1], [], []>} : vector<28x96xf32>, vector<96x168xf32>, vector<28x168xf32> -> vector<28x168xf32>
    %28 = arith.addf %22, %27 : vector<28x168xf32>
    %c0_29 = arith.constant 0 : index
    %c0_30 = arith.constant 0 : index
    %29 = vector.load %arg3[%c0_29, %c0_30] : memref<1x168xf32, #tpu.memory_space<vmem>>, vector<1x168xf32>
    %30 = vector.broadcast %29 : vector<1x168xf32> to vector<28x168xf32>
    %31 = arith.addf %28, %30 : vector<28x168xf32>
    %cst_31 = arith.constant 0.000000e+00 : f32
    %32 = vector.broadcast %cst_31 : f32 to vector<28x168xf32>
    %33 = arith.maximumf %31, %32 : vector<28x168xf32>
    %c0_32 = arith.constant 0 : index
    %c0_33 = arith.constant 0 : index
    %c0_34 = arith.constant 0 : index
    %34 = vector.load %arg4[%c0_32, %c0_33, %c0_34] : memref<2x14x28xf32, #tpu.memory_space<vmem>>, vector<1x14x28xf32>
    %35 = vector.shape_cast %34 : vector<1x14x28xf32> to vector<14x28xf32>
    %cst_35 = arith.constant dense<0.000000e+00> : vector<14x168xf32>
    %36 = tpu.matmul %35, %33, %cst_35 {dimension_numbers = #tpu.dot_dimension_numbers<[1], [0], [0], [1], [0, 0, 1, 1], [], []>} : vector<14x28xf32>, vector<28x168xf32>, vector<14x168xf32> -> vector<14x168xf32>
    %c1_36 = arith.constant 1 : index
    %c0_37 = arith.constant 0 : index
    %c0_38 = arith.constant 0 : index
    %37 = vector.load %arg4[%c1_36, %c0_37, %c0_38] : memref<2x14x28xf32, #tpu.memory_space<vmem>>, vector<1x14x28xf32>
    %38 = vector.shape_cast %37 : vector<1x14x28xf32> to vector<14x28xf32>
    %cst_39 = arith.constant dense<0.000000e+00> : vector<14x168xf32>
    %39 = tpu.matmul %38, %33, %cst_39 {dimension_numbers = #tpu.dot_dimension_numbers<[1], [0], [0], [1], [0, 0, 1, 1], [], []>} : vector<14x28xf32>, vector<28x168xf32>, vector<14x168xf32> -> vector<14x168xf32>
    %40 = arith.maximumf %36, %39 : vector<14x168xf32>
    %c0_40 = arith.constant 0 : index
    %c0_41 = arith.constant 0 : index
    %c0_42 = arith.constant 0 : index
    %41 = vector.load %arg5[%c0_40, %c0_41, %c0_42] : memref<2x168x84xf32, #tpu.memory_space<vmem>>, vector<1x168x84xf32>
    %42 = vector.shape_cast %41 : vector<1x168x84xf32> to vector<168x84xf32>
    %cst_43 = arith.constant dense<0.000000e+00> : vector<14x84xf32>
    %43 = tpu.matmul %40, %42, %cst_43 {dimension_numbers = #tpu.dot_dimension_numbers<[1], [0], [0], [1], [0, 0, 1, 1], [], []>} : vector<14x168xf32>, vector<168x84xf32>, vector<14x84xf32> -> vector<14x84xf32>
    %c1_44 = arith.constant 1 : index
    %c0_45 = arith.constant 0 : index
    %c0_46 = arith.constant 0 : index
    %44 = vector.load %arg5[%c1_44, %c0_45, %c0_46] : memref<2x168x84xf32, #tpu.memory_space<vmem>>, vector<1x168x84xf32>
    %45 = vector.shape_cast %44 : vector<1x168x84xf32> to vector<168x84xf32>
    %cst_47 = arith.constant dense<0.000000e+00> : vector<14x84xf32>
    %46 = tpu.matmul %40, %45, %cst_47 {dimension_numbers = #tpu.dot_dimension_numbers<[1], [0], [0], [1], [0, 0, 1, 1], [], []>} : vector<14x168xf32>, vector<168x84xf32>, vector<14x84xf32> -> vector<14x84xf32>
    %47 = arith.maximumf %43, %46 : vector<14x84xf32>
    %c0_48 = arith.constant 0 : index
    %c0_49 = arith.constant 0 : index
    %48 = vector.load %arg17[%c0_48, %c0_49] : memref<14x84xf32, #tpu.memory_space<vmem>>, vector<14x84xf32>
    tpu.vector_store %arg17[%c0_48, %c0_49], %47 {strides = array<i32>} : memref<14x84xf32, #tpu.memory_space<vmem>>, vector<14x84xf32>,
    %c0_50 = arith.constant 0 : index
    %c0_51 = arith.constant 0 : index
    %49 = vector.load %arg17[%c0_50, %c0_51] : memref<14x84xf32, #tpu.memory_space<vmem>>, vector<10x84xf32>
    %c0_52 = arith.constant 0 : index
    %c0_53 = arith.constant 0 : index
    %c0_54 = arith.constant 0 : index
    %50 = vector.load %arg6[%c0_52, %c0_53, %c0_54] : memref<5x84x160xf32, #tpu.memory_space<vmem>>, vector<1x84x160xf32>
    %51 = vector.shape_cast %50 : vector<1x84x160xf32> to vector<84x160xf32>
    %cst_55 = arith.constant dense<0.000000e+00> : vector<10x160xf32>
    %52 = tpu.matmul %49, %51, %cst_55 {dimension_numbers = #tpu.dot_dimension_numbers<[1], [0], [0], [1], [0, 0, 1, 1], [], []>} : vector<10x84xf32>, vector<84x160xf32>, vector<10x160xf32> -> vector<10x160xf32>
    %c1_56 = arith.constant 1 : index
    %c0_57 = arith.constant 0 : index
    %53 = vector.load %arg17[%c1_56, %c0_57] : memref<14x84xf32, #tpu.memory_space<vmem>>, vector<10x84xf32>
    %c1_58 = arith.constant 1 : index
    %c0_59 = arith.constant 0 : index
    %c0_60 = arith.constant 0 : index
    %54 = vector.load %arg6[%c1_58, %c0_59, %c0_60] : memref<5x84x160xf32, #tpu.memory_space<vmem>>, vector<1x84x160xf32>
    %55 = vector.shape_cast %54 : vector<1x84x160xf32> to vector<84x160xf32>
    %cst_61 = arith.constant dense<0.000000e+00> : vector<10x160xf32>
    %56 = tpu.matmul %53, %55, %cst_61 {dimension_numbers = #tpu.dot_dimension_numbers<[1], [0], [0], [1], [0, 0, 1, 1], [], []>} : vector<10x84xf32>, vector<84x160xf32>, vector<10x160xf32> -> vector<10x160xf32>
    %57 = arith.addf %52, %56 : vector<10x160xf32>
    %c2_62 = arith.constant 2 : index
    %c0_63 = arith.constant 0 : index
    %58 = vector.load %arg17[%c2_62, %c0_63] : memref<14x84xf32, #tpu.memory_space<vmem>>, vector<10x84xf32>
    %c2_64 = arith.constant 2 : index
    %c0_65 = arith.constant 0 : index
    %c0_66 = arith.constant 0 : index
    %59 = vector.load %arg6[%c2_64, %c0_65, %c0_66] : memref<5x84x160xf32, #tpu.memory_space<vmem>>, vector<1x84x160xf32>
    %60 = vector.shape_cast %59 : vector<1x84x160xf32> to vector<84x160xf32>
    %cst_67 = arith.constant dense<0.000000e+00> : vector<10x160xf32>
    %61 = tpu.matmul %58, %60, %cst_67 {dimension_numbers = #tpu.dot_dimension_numbers<[1], [0], [0], [1], [0, 0, 1, 1], [], []>} : vector<10x84xf32>, vector<84x160xf32>, vector<10x160xf32> -> vector<10x160xf32>
    %62 = arith.addf %57, %61 : vector<10x160xf32>
    %c3_68 = arith.constant 3 : index
    %c0_69 = arith.constant 0 : index
    %63 = vector.load %arg17[%c3_68, %c0_69] : memref<14x84xf32, #tpu.memory_space<vmem>>, vector<10x84xf32>
    %c3_70 = arith.constant 3 : index
    %c0_71 = arith.constant 0 : index
    %c0_72 = arith.constant 0 : index
    %64 = vector.load %arg6[%c3_70, %c0_71, %c0_72] : memref<5x84x160xf32, #tpu.memory_space<vmem>>, vector<1x84x160xf32>
    %65 = vector.shape_cast %64 : vector<1x84x160xf32> to vector<84x160xf32>
    %cst_73 = arith.constant dense<0.000000e+00> : vector<10x160xf32>
    %66 = tpu.matmul %63, %65, %cst_73 {dimension_numbers = #tpu.dot_dimension_numbers<[1], [0], [0], [1], [0, 0, 1, 1], [], []>} : vector<10x84xf32>, vector<84x160xf32>, vector<10x160xf32> -> vector<10x160xf32>
    %67 = arith.addf %62, %66 : vector<10x160xf32>
    %c4_74 = arith.constant 4 : index
    %c0_75 = arith.constant 0 : index
    %68 = vector.load %arg17[%c4_74, %c0_75] : memref<14x84xf32, #tpu.memory_space<vmem>>, vector<10x84xf32>
    %c4_76 = arith.constant 4 : index
    %c0_77 = arith.constant 0 : index
    %c0_78 = arith.constant 0 : index
    %69 = vector.load %arg6[%c4_76, %c0_77, %c0_78] : memref<5x84x160xf32, #tpu.memory_space<vmem>>, vector<1x84x160xf32>
    %70 = vector.shape_cast %69 : vector<1x84x160xf32> to vector<84x160xf32>
    %cst_79 = arith.constant dense<0.000000e+00> : vector<10x160xf32>
    %71 = tpu.matmul %68, %70, %cst_79 {dimension_numbers = #tpu.dot_dimension_numbers<[1], [0], [0], [1], [0, 0, 1, 1], [], []>} : vector<10x84xf32>, vector<84x160xf32>, vector<10x160xf32> -> vector<10x160xf32>
    %72 = arith.addf %67, %71 : vector<10x160xf32>
    %c0_80 = arith.constant 0 : index
    %c0_81 = arith.constant 0 : index
    %73 = vector.load %arg7[%c0_80, %c0_81] : memref<1x160xf32, #tpu.memory_space<vmem>>, vector<1x160xf32>
    %74 = vector.broadcast %73 : vector<1x160xf32> to vector<10x160xf32>
    %75 = arith.addf %72, %74 : vector<10x160xf32>
    %cst_82 = arith.constant 0.000000e+00 : f32
    %76 = vector.broadcast %cst_82 : f32 to vector<10x160xf32>
    %77 = arith.maximumf %75, %76 : vector<10x160xf32>
    %c0_83 = arith.constant 0 : index
    %c0_84 = arith.constant 0 : index
    %c0_85 = arith.constant 0 : index
    %78 = vector.load %arg8[%c0_83, %c0_84, %c0_85] : memref<2x5x10xf32, #tpu.memory_space<vmem>>, vector<1x5x10xf32>
    %79 = vector.shape_cast %78 : vector<1x5x10xf32> to vector<5x10xf32>
    %cst_86 = arith.constant dense<0.000000e+00> : vector<5x160xf32>
    %80 = tpu.matmul %79, %77, %cst_86 {dimension_numbers = #tpu.dot_dimension_numbers<[1], [0], [0], [1], [0, 0, 1, 1], [], []>} : vector<5x10xf32>, vector<10x160xf32>, vector<5x160xf32> -> vector<5x160xf32>
    %c1_87 = arith.constant 1 : index
    %c0_88 = arith.constant 0 : index
    %c0_89 = arith.constant 0 : index
    %81 = vector.load %arg8[%c1_87, %c0_88, %c0_89] : memref<2x5x10xf32, #tpu.memory_space<vmem>>, vector<1x5x10xf32>
    %82 = vector.shape_cast %81 : vector<1x5x10xf32> to vector<5x10xf32>
    %cst_90 = arith.constant dense<0.000000e+00> : vector<5x160xf32>
    %83 = tpu.matmul %82, %77, %cst_90 {dimension_numbers = #tpu.dot_dimension_numbers<[1], [0], [0], [1], [0, 0, 1, 1], [], []>} : vector<5x10xf32>, vector<10x160xf32>, vector<5x160xf32> -> vector<5x160xf32>
    %84 = arith.maximumf %80, %83 : vector<5x160xf32>
    %c0_91 = arith.constant 0 : index
    %c0_92 = arith.constant 0 : index
    %c0_93 = arith.constant 0 : index
    %85 = vector.load %arg9[%c0_91, %c0_92, %c0_93] : memref<2x160x80xf32, #tpu.memory_space<vmem>>, vector<1x160x80xf32>
    %86 = vector.shape_cast %85 : vector<1x160x80xf32> to vector<160x80xf32>
    %cst_94 = arith.constant dense<0.000000e+00> : vector<5x80xf32>
    %87 = tpu.matmul %84, %86, %cst_94 {dimension_numbers = #tpu.dot_dimension_numbers<[1], [0], [0], [1], [0, 0, 1, 1], [], []>} : vector<5x160xf32>, vector<160x80xf32>, vector<5x80xf32> -> vector<5x80xf32>
    %c1_95 = arith.constant 1 : index
    %c0_96 = arith.constant 0 : index
    %c0_97 = arith.constant 0 : index
    %88 = vector.load %arg9[%c1_95, %c0_96, %c0_97] : memref<2x160x80xf32, #tpu.memory_space<vmem>>, vector<1x160x80xf32>
    %89 = vector.shape_cast %88 : vector<1x160x80xf32> to vector<160x80xf32>
    %cst_98 = arith.constant dense<0.000000e+00> : vector<5x80xf32>
    %90 = tpu.matmul %84, %89, %cst_98 {dimension_numbers = #tpu.dot_dimension_numbers<[1], [0], [0], [1], [0, 0, 1, 1], [], []>} : vector<5x160xf32>, vector<160x80xf32>, vector<5x80xf32> -> vector<5x80xf32>
    %91 = arith.maximumf %87, %90 : vector<5x80xf32>
    %c0_99 = arith.constant 0 : index
    %c0_100 = arith.constant 0 : index
    %92 = vector.load %arg18[%c0_99, %c0_100] : memref<5x80xf32, #tpu.memory_space<vmem>>, vector<5x80xf32>
    tpu.vector_store %arg18[%c0_99, %c0_100], %91 {strides = array<i32>} : memref<5x80xf32, #tpu.memory_space<vmem>>, vector<5x80xf32>,
    %c0_101 = arith.constant 0 : index
    %c0_102 = arith.constant 0 : index
    %93 = vector.load %arg18[%c0_101, %c0_102] : memref<5x80xf32, #tpu.memory_space<vmem>>, vector<1x80xf32>
    %c0_103 = arith.constant 0 : index
    %c0_104 = arith.constant 0 : index
    %c0_105 = arith.constant 0 : index
    %94 = vector.load %arg10[%c0_103, %c0_104, %c0_105] : memref<5x80x128xf32, #tpu.memory_space<vmem>>, vector<1x80x128xf32>
    %95 = vector.shape_cast %94 : vector<1x80x128xf32> to vector<80x128xf32>
    %cst_106 = arith.constant dense<0.000000e+00> : vector<1x128xf32>
    %96 = tpu.matmul %93, %95, %cst_106 {dimension_numbers = #tpu.dot_dimension_numbers<[1], [0], [0], [1], [0, 0, 1, 1], [], []>} : vector<1x80xf32>, vector<80x128xf32>, vector<1x128xf32> -> vector<1x128xf32>
    %c1_107 = arith.constant 1 : index
    %c0_108 = arith.constant 0 : index
    %97 = vector.load %arg18[%c1_107, %c0_108] : memref<5x80xf32, #tpu.memory_space<vmem>>, vector<1x80xf32>
    %c1_109 = arith.constant 1 : index
    %c0_110 = arith.constant 0 : index
    %c0_111 = arith.constant 0 : index
    %98 = vector.load %arg10[%c1_109, %c0_110, %c0_111] : memref<5x80x128xf32, #tpu.memory_space<vmem>>, vector<1x80x128xf32>
    %99 = vector.shape_cast %98 : vector<1x80x128xf32> to vector<80x128xf32>
    %cst_112 = arith.constant dense<0.000000e+00> : vector<1x128xf32>
    %100 = tpu.matmul %97, %99, %cst_112 {dimension_numbers = #tpu.dot_dimension_numbers<[1], [0], [0], [1], [0, 0, 1, 1], [], []>} : vector<1x80xf32>, vector<80x128xf32>, vector<1x128xf32> -> vector<1x128xf32>
    %101 = arith.addf %96, %100 : vector<1x128xf32>
    %c2_113 = arith.constant 2 : index
    %c0_114 = arith.constant 0 : index
    %102 = vector.load %arg18[%c2_113, %c0_114] : memref<5x80xf32, #tpu.memory_space<vmem>>, vector<1x80xf32>
    %c2_115 = arith.constant 2 : index
    %c0_116 = arith.constant 0 : index
    %c0_117 = arith.constant 0 : index
    %103 = vector.load %arg10[%c2_115, %c0_116, %c0_117] : memref<5x80x128xf32, #tpu.memory_space<vmem>>, vector<1x80x128xf32>
    %104 = vector.shape_cast %103 : vector<1x80x128xf32> to vector<80x128xf32>
    %cst_118 = arith.constant dense<0.000000e+00> : vector<1x128xf32>
    %105 = tpu.matmul %102, %104, %cst_118 {dimension_numbers = #tpu.dot_dimension_numbers<[1], [0], [0], [1], [0, 0, 1, 1], [], []>} : vector<1x80xf32>, vector<80x128xf32>, vector<1x128xf32> -> vector<1x128xf32>
    %106 = arith.addf %101, %105 : vector<1x128xf32>
    %c3_119 = arith.constant 3 : index
    %c0_120 = arith.constant 0 : index
    %107 = vector.load %arg18[%c3_119, %c0_120] : memref<5x80xf32, #tpu.memory_space<vmem>>, vector<1x80xf32>
    %c3_121 = arith.constant 3 : index
    %c0_122 = arith.constant 0 : index
    %c0_123 = arith.constant 0 : index
    %108 = vector.load %arg10[%c3_121, %c0_122, %c0_123] : memref<5x80x128xf32, #tpu.memory_space<vmem>>, vector<1x80x128xf32>
    %109 = vector.shape_cast %108 : vector<1x80x128xf32> to vector<80x128xf32>
    %cst_124 = arith.constant dense<0.000000e+00> : vector<1x128xf32>
    %110 = tpu.matmul %107, %109, %cst_124 {dimension_numbers = #tpu.dot_dimension_numbers<[1], [0], [0], [1], [0, 0, 1, 1], [], []>} : vector<1x80xf32>, vector<80x128xf32>, vector<1x128xf32> -> vector<1x128xf32>
    %111 = arith.addf %106, %110 : vector<1x128xf32>
    %c4_125 = arith.constant 4 : index
    %c0_126 = arith.constant 0 : index
    %112 = vector.load %arg18[%c4_125, %c0_126] : memref<5x80xf32, #tpu.memory_space<vmem>>, vector<1x80xf32>
    %c4_127 = arith.constant 4 : index
    %c0_128 = arith.constant 0 : index
    %c0_129 = arith.constant 0 : index
    %113 = vector.load %arg10[%c4_127, %c0_128, %c0_129] : memref<5x80x128xf32, #tpu.memory_space<vmem>>, vector<1x80x128xf32>
    %114 = vector.shape_cast %113 : vector<1x80x128xf32> to vector<80x128xf32>
    %cst_130 = arith.constant dense<0.000000e+00> : vector<1x128xf32>
    %115 = tpu.matmul %112, %114, %cst_130 {dimension_numbers = #tpu.dot_dimension_numbers<[1], [0], [0], [1], [0, 0, 1, 1], [], []>} : vector<1x80xf32>, vector<80x128xf32>, vector<1x128xf32> -> vector<1x128xf32>
    %116 = arith.addf %111, %115 : vector<1x128xf32>
    %c0_131 = arith.constant 0 : index
    %c0_132 = arith.constant 0 : index
    %117 = vector.load %arg11[%c0_131, %c0_132] : memref<1x128xf32, #tpu.memory_space<vmem>>, vector<1x128xf32>
    %118 = arith.addf %116, %117 : vector<1x128xf32>
    %cst_133 = arith.constant 0.000000e+00 : f32
    %119 = vector.broadcast %cst_133 : f32 to vector<1x128xf32>
    %120 = arith.maximumf %118, %119 : vector<1x128xf32>
    %c0_134 = arith.constant 0 : index
    %c0_135 = arith.constant 0 : index
    %121 = vector.load %arg12[%c0_134, %c0_135] : memref<128x128xf32, #tpu.memory_space<vmem>>, vector<128x128xf32>
    %cst_136 = arith.constant dense<0.000000e+00> : vector<1x128xf32>
    %122 = tpu.matmul %120, %121, %cst_136 {dimension_numbers = #tpu.dot_dimension_numbers<[1], [0], [0], [1], [0, 0, 1, 1], [], []>} : vector<1x128xf32>, vector<128x128xf32>, vector<1x128xf32> -> vector<1x128xf32>
    %c0_137 = arith.constant 0 : index
    %c0_138 = arith.constant 0 : index
    %123 = vector.load %arg13[%c0_137, %c0_138] : memref<1x128xf32, #tpu.memory_space<vmem>>, vector<1x128xf32>
    %124 = arith.addf %122, %123 : vector<1x128xf32>
    %cst_139 = arith.constant 0.000000e+00 : f32
    %125 = vector.broadcast %cst_139 : f32 to vector<1x128xf32>
    %126 = arith.maximumf %124, %125 : vector<1x128xf32>
    %c0_140 = arith.constant 0 : index
    %c0_141 = arith.constant 0 : index
    %127 = vector.load %arg14[%c0_140, %c0_141] : memref<128x128xf32, #tpu.memory_space<vmem>>, vector<128x128xf32>
    %cst_142 = arith.constant dense<0.000000e+00> : vector<1x128xf32>
    %128 = tpu.matmul %126, %127, %cst_142 {dimension_numbers = #tpu.dot_dimension_numbers<[1], [0], [0], [1], [0, 0, 1, 1], [], []>} : vector<1x128xf32>, vector<128x128xf32>, vector<1x128xf32> -> vector<1x128xf32>
    %c0_143 = arith.constant 0 : index
    %c0_144 = arith.constant 0 : index
    %129 = vector.load %arg15[%c0_143, %c0_144] : memref<1x128xf32, #tpu.memory_space<vmem>>, vector<1x128xf32>
    %130 = arith.addf %128, %129 : vector<1x128xf32>
    %c0_145 = arith.constant 0 : index
    %c0_146 = arith.constant 0 : index
    %c0_147 = arith.constant 0 : index
    %131 = vector.load %arg16[%c0_145, %c0_146, %c0_147] : memref<1x1x128xf32, #tpu.memory_space<vmem>>, vector<1x1x128xf32>
    %132 = vector.shape_cast %131 : vector<1x1x128xf32> to vector<1x128xf32>
    %133 = vector.shape_cast %130 : vector<1x128xf32> to vector<1x1x128xf32>
    tpu.vector_store %arg16[%c0_145, %c0_146, %c0_147], %133 {strides = array<i32>} : memref<1x1x128xf32, #tpu.memory_space<vmem>>, vector<1x1x128xf32>,
    return
  }
  func.func @transform_0(%arg0: i32) -> (i32, i32, i32) {
    %c0_i32 = arith.constant 0 : i32
    %c0_i32_0 = arith.constant 0 : i32
    %c0_i32_1 = arith.constant 0 : i32
    return %arg0, %c0_i32, %c0_i32_0 : i32, i32, i32
  }
  func.func @transform_1(%arg0: i32) -> (i32, i32, i32) {
    %c0_i32 = arith.constant 0 : i32
    %c0_i32_0 = arith.constant 0 : i32
    %c0_i32_1 = arith.constant 0 : i32
    %c0_i32_2 = arith.constant 0 : i32
    return %c0_i32, %c0_i32_0, %c0_i32_1 : i32, i32, i32
  }
  func.func @transform_2(%arg0: i32) -> (i32, i32) {
    %c0_i32 = arith.constant 0 : i32
    %c0_i32_0 = arith.constant 0 : i32
    %c0_i32_1 = arith.constant 0 : i32
    return %c0_i32, %c0_i32_0 : i32, i32
  }
  func.func @transform_3(%arg0: i32) -> (i32, i32, i32) {
    %c0_i32 = arith.constant 0 : i32
    %c0_i32_0 = arith.constant 0 : i32
    %c0_i32_1 = arith.constant 0 : i32
    %c0_i32_2 = arith.constant 0 : i32
    return %c0_i32, %c0_i32_0, %c0_i32_1 : i32, i32, i32
  }
  func.func @transform_4(%arg0: i32) -> (i32, i32, i32) {
    %c0_i32 = arith.constant 0 : i32
    %c0_i32_0 = arith.constant 0 : i32
    %c0_i32_1 = arith.constant 0 : i32
    %c0_i32_2 = arith.constant 0 : i32
    return %c0_i32, %c0_i32_0, %c0_i32_1 : i32, i32, i32
  }
  func.func @transform_5(%arg0: i32) -> (i32, i32, i32) {
    %c0_i32 = arith.constant 0 : i32
    %c0_i32_0 = arith.constant 0 : i32
    %c0_i32_1 = arith.constant 0 : i32
    %c0_i32_2 = arith.constant 0 : i32
    return %c0_i32, %c0_i32_0, %c0_i32_1 : i32, i32, i32
  }
  func.func @transform_6(%arg0: i32) -> (i32, i32) {
    %c0_i32 = arith.constant 0 : i32
    %c0_i32_0 = arith.constant 0 : i32
    %c0_i32_1 = arith.constant 0 : i32
    return %c0_i32, %c0_i32_0 : i32, i32
  }
  func.func @transform_7(%arg0: i32) -> (i32, i32, i32) {
    %c0_i32 = arith.constant 0 : i32
    %c0_i32_0 = arith.constant 0 : i32
    %c0_i32_1 = arith.constant 0 : i32
    %c0_i32_2 = arith.constant 0 : i32
    return %c0_i32, %c0_i32_0, %c0_i32_1 : i32, i32, i32
  }
  func.func @transform_8(%arg0: i32) -> (i32, i32, i32) {
    %c0_i32 = arith.constant 0 : i32
    %c0_i32_0 = arith.constant 0 : i32
    %c0_i32_1 = arith.constant 0 : i32
    %c0_i32_2 = arith.constant 0 : i32
    return %c0_i32, %c0_i32_0, %c0_i32_1 : i32, i32, i32
  }
  func.func @transform_9(%arg0: i32) -> (i32, i32, i32) {
    %c0_i32 = arith.constant 0 : i32
    %c0_i32_0 = arith.constant 0 : i32
    %c0_i32_1 = arith.constant 0 : i32
    %c0_i32_2 = arith.constant 0 : i32
    return %c0_i32, %c0_i32_0, %c0_i32_1 : i32, i32, i32
  }
  func.func @transform_10(%arg0: i32) -> (i32, i32) {
    %c0_i32 = arith.constant 0 : i32
    %c0_i32_0 = arith.constant 0 : i32
    %c0_i32_1 = arith.constant 0 : i32
    return %c0_i32, %c0_i32_0 : i32, i32
  }
  func.func @transform_11(%arg0: i32) -> (i32, i32) {
    %c0_i32 = arith.constant 0 : i32
    %c0_i32_0 = arith.constant 0 : i32
    %c0_i32_1 = arith.constant 0 : i32
    return %c0_i32, %c0_i32_0 : i32, i32
  }
  func.func @transform_12(%arg0: i32) -> (i32, i32) {
    %c0_i32 = arith.constant 0 : i32
    %c0_i32_0 = arith.constant 0 : i32
    %c0_i32_1 = arith.constant 0 : i32
    return %c0_i32, %c0_i32_0 : i32, i32
  }
  func.func @transform_13(%arg0: i32) -> (i32, i32) {
    %c0_i32 = arith.constant 0 : i32
    %c0_i32_0 = arith.constant 0 : i32
    %c0_i32_1 = arith.constant 0 : i32
    return %c0_i32, %c0_i32_0 : i32, i32
  }
  func.func @transform_14(%arg0: i32) -> (i32, i32) {
    %c0_i32 = arith.constant 0 : i32
    %c0_i32_0 = arith.constant 0 : i32
    %c0_i32_1 = arith.constant 0 : i32
    return %c0_i32, %c0_i32_0 : i32, i32
  }
  func.func @transform_15(%arg0: i32) -> (i32, i32, i32) {
    %c0_i32 = arith.constant 0 : i32
    %c0_i32_0 = arith.constant 0 : i32
    %c0_i32_1 = arith.constant 0 : i32
    return %arg0, %c0_i32, %c0_i32_0 : i32, i32, i32
  }
}

</mosaic_0001>

<bundles_post_ra>
// kernel: cnn_sample_forward.1
= control target key start
LH: loop header
LB: loop body
LE: loop exit
PB: predicated region body
PF: predicated region fallthrough
CT: control target
= control target key end

     0   :  { %20 = vsyncpa [#allocation5], 0  ;;  %s5630_s0 = inlined_call_operand.vmem [shape: f32[2,32,96], index: 0, kind: input, shape index: {}]   ;;  %s5631_s1 = inlined_call_operand.vmem [shape: f32[5,96,168], index: 1, kind: input, shape index: {}]   ;;  %s5632_s2 = inlined_call_operand.vmem [shape: f32[1,168], index: 2, kind: input, shape index: {}]   ;;  %s5633_s3 = inlined_call_operand.vmem [shape: f32[2,14,28], index: 3, kind: input, shape index: {}]   ;;  %s5634_s4 = inlined_call_operand.vmem [shape: f32[2,168,84], index: 4, kind: input, shape index: {}]   ;;  %s5635_s5 = inlined_call_operand.vmem [shape: f32[5,84,160], index: 5, kind: input, shape index: {}]   ;;  %s5636_s6 = inlined_call_operand.vmem [shape: f32[1,160], index: 6, kind: input, shape index: {}]   ;;  %s5637_s7 = inlined_call_operand.vmem [shape: f32[2,5,10], index: 7, kind: input, shape index: {}]   ;;  %s5638_s8 = inlined_call_operand.vmem [shape: f32[2,160,80], index: 8, kind: input, shape index: {}]   ;;  %s5639_s9 = inlined_call_operand.vmem [shape: f32[5,80,128], index: 9, kind: input, shape index: {}]   ;;  %s5640_s10 = inlined_call_operand.vmem [shape: f32[1,128], index: 10, kind: input, shape index: {}]   ;;  %s5641_s11 = inlined_call_operand.vmem [shape: f32[128,128], index: 11, kind: input, shape index: {}]   ;;  %s5642_s12 = inlined_call_operand.vmem [shape: f32[1,128], index: 12, kind: input, shape index: {}]   ;;  %s5643_s13 = inlined_call_operand.vmem [shape: f32[128,128], index: 13, kind: input, shape index: {}]   ;;  %s5644_s14 = inlined_call_operand.vmem [shape: f32[1,128], index: 14, kind: input, shape index: {}]   ;;  %s5645_s15 = inlined_call_operand.hbm [shape: f32[2,1,128], index: 15, kind: output, shape index: {}]  }
   0x1   :  { %22 = vsyncpa [#allocation5 + $0x1], 0  ;;  %s4011_s18 = smov 0   ;;  %s4013_s19 = smov 0  }
   0x2   :  { %s4015_s20 = smov 0   ;;  %s4017_s21 = smov 0  }
   0x3 LB: > { %5652 = sst [smem:[#allocation7_spill]] %s3914_s18  ;;  %s4032_s22 = sadd.s32 4294967295, %s3926_s21   ;;  %s3926_s21 = sphi %s4017_s21, %s5663_s21   ;;  %s3922_s20 = sphi %s4015_s20, %s5668_s20   ;;  %s3918_s19 = sphi %s4013_s19, %s5667_s19   ;;  %s3914_s18 = sphi %s4011_s18, %s5666_s18  }
   0x4   : > { %5653 = sst [smem:[#allocation8_spill]] %s3922_s20  ;;  %s3208_s23 = sadd.s32 4294967294, %s3926_s21  }
   0x5   : > { %5654 = sst [smem:[#allocation9_spill]] %s3926_s21  ;;  %s4036_s24 = sadd.s32 1, %s3926_s21  }
   0x6   : > { %5655 = sst [smem:[#allocation10_spill]] %s4036_s24  ;;  %s355_s25 = sadd.s32 1, %s3922_s20 }
   0x7   : > { %s352_s26 = ssub.s32 %s3926_s21, %s4036_s24  ;;  %p365_p0 = scmp.ne.s32.totalorder %s3922_s20, %s3918_s19 }
   0x8   : > { %p353_p1 = scmp.eq.s32.totalorder %s352_s26, 0  ;;  %p366_p2 = scmp.eq.s32.totalorder %s4032_s22, 1 }
   0x9   : > { %p371_p3 = scmp.ne.s32.totalorder %s3918_s19, %s3914_s18  ;;  %p372_p4 = scmp.eq.s32.totalorder %s3208_s23, 1 }
   0xa   : > { %s4047_s27 = scalar_select %p353_p1, %s3922_s20, %s355_s25  }
   0xb   : > { %p4049_p5 = por %p366_p2, %p365_p0  ;;  %p4053_p6 = por %p372_p4, %p371_p3 }
   0xc   : > { %5656 = sst [smem:[#allocation11_spill]] %s4047_s27  ;;  %p3211_p7 = scmp.ge.s32.totalorder %s3926_s21, 1 }
   0xd   : > { %s5658_s29 = scalar_select %p4053_p6, 1, 0 }
   0xe   : > { %p440_p8 = scmp.lt.s32.totalorder %s3926_s21, 3 }
   0xf   : > { %5659 = sst [smem:[#allocation12_spill]] %s5658_s29 }
  0x10   : > { %p441_p9 = pnand %p3211_p7, %p440_p8 }
  0x11   : > { %p487_p10 = scmp.lt.s32.totalorder (!%p441_p9), %s4032_s22, 1  ;;  %s485_s23 = sand.u32 (!%p441_p9), 1, %s3918_s19  }
  0x12   : > { %444 = sbr.rel (%p441_p9) target bundleno = 2042 (0x7fa), region = 80  ;;  %s3547_s20 = sshll.u32 (!%p441_p9), %s4032_s22, 4 }
  0x13   : > { %s486_s27 = scalar_lea.vmem (!%p441_p9), [#allocation4], %s485_s23  ;;  %s3141_s30 = scalar_lea.sflag (!%p441_p9), [#allocation5], %s485_s23 }
  0x14   : > { %s3153_s24 = sshll.u32 (!%p441_p9), %s486_s27, 4  ;;  %s3930_s18 = smov (!%p441_p9), [#allocation4]   ;;  %s3154_s24 = int_to_ptr.vmem [resolvable:$true] %s3153_s24 }
  0x15   : > { %s3866_s17 = scalar_lea.vmem (!%p441_p9), %s3154_s24, 16 }
  0x16   : > { %p3867_p11 = scmp.ne.s32.totalorder (!%p441_p9), %s3154_s24, %s3866_s17 }
  0x17   : > { %v3237_v0 = vld [vmem:[%s5631_s1 + $0x178] sm:$0xff]  ;;  %v3236_v2 = vld [vmem:[%s5631_s1 + $0x170] sm:$0xff]  ;;  %v3235_v4 = vld [vmem:[%s5631_s1 + $0x168] sm:$0xff]  ;;  %s4159_s25 = scalar_select %p487_p10, %s4032_s22, 1  ;;  %vm549_vm0 = vcmask 785408   ;;  %v3928_v50 = vmov 0.0  }
  0x18   : > { %v519_v1 = vld [vmem:[%s5631_s1 + $0xb8] sm:$0xff]  ;;  %570 = vmatprep.subr.mxu0 %v3237_v0  ;;  %v518_v3 = vld [vmem:[%s5631_s1 + $0xb0] sm:$0xff]  ;;  %v517_v5 = vld [vmem:[%s5631_s1 + $0xa8] sm:$0xff]  ;;  %626 = vmatprep.mubr.f32.mxu0 %v3928_v50  ;;  %vm1203_vm1 = vcmask 1043456   ;;  %vm1196_vm2 = vcmask 228352   ;;  %vm1398_vm3 = vcmask 326656   ;;  %p3868_p12 = pnand %p3867_p11, %p4049_p5 }
  0x19   : > { %671 = vmatprep.subr.mxu1 %v519_v1  ;;  %571 = vmatpush1.msra.mxu0 %v3236_v2  ;;  %v3234_v6 = vld [vmem:[%s5631_s1 + $0x160] sm:$0xff]  ;;  %v3233_v8 = vld [vmem:[%s5631_s1 + $0x158] sm:$0xff]  ;;  %v3232_v10 = vld [vmem:[%s5631_s1 + $0x150] sm:$0xff]  ;;  %s3550_s16 = sshll.u32 %s4159_s25, 5  ;;  %vm1579_vm4 = vcmask 687104   ;;  %vm1581_vm5 = vcmask 685056   ;;  %s5595_s25 = scalar_lea.hbm %s5645_s15, %s3547_s20 }
  0x1a   : > { %672 = vmatpush1.msra.mxu1 %v518_v3  ;;  %v516_v7 = vld [vmem:[%s5631_s1 + $0xa0] sm:$0xff]  ;;  %572 = vmatprep.subr.mxu0 %v3235_v4  ;;  %v515_v9 = vld [vmem:[%s5631_s1 + $0x98] sm:$0xff]  ;;  %v514_v11 = vld [vmem:[%s5631_s1 + $0x90] sm:$0xff]  ;;  %s4207_s21 = scalar_lea.vmem %s5630_s0, %s3550_s16  ;;  %vm2189_vm6 = vcmask 1041408   ;;  %vm2185_vm7 = vcmask 80896   ;;  %vm2365_vm8 = vcmask 261120   ;;  %p3869_p13 = pneg %p3868_p12 }
  0x1b   : > { %673 = vmatprep.subr.mxu1 %v517_v5  ;;  %573 = vmatpush1.msra.mxu0 %v3234_v6  ;;  %v3231_v12 = vld [vmem:[%s5631_s1 + $0x148] sm:$0xff]  ;;  %v3230_v14 = vld [vmem:[%s5631_s1 + $0x140] sm:$0xff]  ;;  %v3229_v16 = vld [vmem:[%s5631_s1 + $0x138] sm:$0xff]  ;;  %vm3929_vm9 = vmmov 0   ;;  %vm2531_vm10 = vcmask 651264   ;;  %vm2556_vm11 = vcmask 654336  }
  0x1c   : > { %674 = vmatpush1.msra.mxu1 %v516_v7  ;;  %v513_v13 = vld [vmem:[%s5631_s1 + $0x88] sm:$0xff]  ;;  %574 = vmatprep.subr.mxu0 %v3233_v8  ;;  %v512_v15 = vld [vmem:[%s5631_s1 + $0x80] sm:$0xff]  ;;  %v511_v17 = vld [vmem:[%s5631_s1 + $0x78] sm:$0xff]  ;;  %s3870_s22 = sshll.u32 %s3930_s18, 4  ;;  %s3871_s22 = int_to_ptr.vmem [resolvable:$false] %s3870_s22 }
  0x1d   : > { %675 = vmatprep.subr.mxu1 %v515_v9  ;;  %575 = vmatpush1.msra.mxu0 %v3232_v10  ;;  %v3228_v18 = vld [vmem:[%s5631_s1 + $0x130] sm:$0xff]  ;;  %v3227_v20 = vld [vmem:[%s5631_s1 + $0x128] sm:$0xff]  ;;  %v3226_v22 = vld [vmem:[%s5631_s1 + $0x120] sm:$0xff]  ;;  %s3872_s26 = scalar_lea.vmem %s3871_s22, 32  ;;  %p3873_p0 = scmp.lt.s32.totalorder %s3154_s24, %s3871_s22 }
  0x1e   : > { %676 = vmatpush1.msra.mxu1 %v514_v11  ;;  %576 = vmatprep.subr.mxu0 %v3231_v12  ;;  %v510_v19 = vld [vmem:[%s5631_s1 + $0x70] sm:$0xff]  ;;  %v509_v21 = vld [vmem:[%s5631_s1 + $0x68] sm:$0xff]  ;;  %v508_v23 = vld [vmem:[%s5631_s1 + $0x60] sm:$0xff]  ;;  %p3874_p1 = scmp.lt.s32.totalorder %s3872_s26, %s3866_s17 }
  0x1f   : > { %677 = vmatprep.subr.mxu1 %v513_v13  ;;  %577 = vmatpush1.msra.mxu0 %v3230_v14  ;;  %v3225_v24 = vld [vmem:[%s5631_s1 + $0x118] sm:$0xff]  ;;  %v3224_v26 = vld [vmem:[%s5631_s1 + $0x110] sm:$0xff]  ;;  %v3223_v28 = vld [vmem:[%s5631_s1 + $0x108] sm:$0xff] }
  0x20   : > { %678 = vmatpush1.msra.mxu1 %v512_v15  ;;  %578 = vmatprep.subr.mxu0 %v3229_v16  ;;  %v507_v25 = vld [vmem:[%s5631_s1 + $0x58] sm:$0xff]  ;;  %v506_v27 = vld [vmem:[%s5631_s1 + $0x50] sm:$0xff]  ;;  %v505_v29 = vld [vmem:[%s5631_s1 + $0x48] sm:$0xff]  ;;  %p3875_p2 = por %p3874_p1, %p3873_p0 }
  0x21   : > { %679 = vmatprep.subr.mxu1 %v511_v17  ;;  %579 = vmatpush1.msra.mxu0 %v3228_v18  ;;  %v3222_v30 = vld [vmem:[%s5631_s1 + $0x100] sm:$0xff]  ;;  %v3221_v32 = vld [vmem:[%s5631_s1 + $0xf8] sm:$0xff]  ;;  %v3220_v34 = vld [vmem:[%s5631_s1 + $0xf0] sm:$0xff] }
  0x22   : > { %680 = vmatpush1.msra.mxu1 %v510_v19  ;;  %580 = vmatprep.subr.mxu0 %v3227_v20  ;;  %v504_v31 = vld [vmem:[%s5631_s1 + $0x40] sm:$0xff]  ;;  %v503_v33 = vld [vmem:[%s5631_s1 + $0x38] sm:$0xff]  ;;  %v502_v35 = vld [vmem:[%s5631_s1 + $0x30] sm:$0xff]  ;;  %p3876_p3 = pnand %p3875_p2, %p3869_p13 }
  0x23   : > { %681 = vmatprep.subr.mxu1 %v509_v21  ;;  %581 = vmatpush1.msra.mxu0 %v3226_v22  ;;  %v3219_v36 = vld [vmem:[%s5631_s1 + $0xe8] sm:$0xff]  ;;  %v3218_v38 = vld [vmem:[%s5631_s1 + $0xe0] sm:$0xff]  ;;  %v3217_v40 = vld [vmem:[%s5631_s1 + $0xd8] sm:$0xff] }
  0x24   : > { %682 = vmatpush1.msra.mxu1 %v508_v23  ;;  %582 = vmatprep.subr.mxu0 %v3225_v24  ;;  %v501_v37 = vld [vmem:[%s5631_s1 + $0x28] sm:$0xff]  ;;  %v500_v39 = vld [vmem:[%s5631_s1 + $0x20] sm:$0xff]  ;;  %v499_v41 = vld [vmem:[%s5631_s1 + $0x18] sm:$0xff] }
  0x25   : > { %683 = vmatprep.subr.mxu1 %v507_v25  ;;  %583 = vmatpush1.msra.mxu0 %v3224_v26  ;;  %v3216_v42 = vld [vmem:[%s5631_s1 + $0xd0] sm:$0xff]  ;;  %v3215_v44 = vld [vmem:[%s5631_s1 + $0xc8] sm:$0xff]  ;;  %v3214_v46 = vld [vmem:[%s5631_s1 + $0xc0] sm:$0xff] }
  0x26   : > { %684 = vmatpush1.msra.mxu1 %v506_v27  ;;  %584 = vmatprep.subr.mxu0 %v3223_v28  ;;  %v498_v43 = vld [vmem:[%s5631_s1 + $0x10] sm:$0xff]  ;;  %v497_v45 = vld [vmem:[%s5631_s1 + $0x8] sm:$0xff]  ;;  %v496_v47 = vld [vmem:[%s5631_s1] sm:$0xff] }
  0x27   : > { %685 = vmatprep.subr.mxu1 %v505_v29  ;;  %585 = vmatpush1.msra.mxu0 %v3222_v30  ;;  %v520_v48 = vld [vmem:[%s4207_s21 + $0x1] sm:$0xff]  ;;  %v3269_v51 = vld [vmem:[%s5631_s1 + $0x238] sm:$0xff]  ;;  %v3268_v53 = vld [vmem:[%s5631_s1 + $0x230] sm:$0xff] }
  0x28   : > { %686 = vmatpush1.msra.mxu1 %v504_v31  ;;  %586 = vmatprep.subr.mxu0 %v3221_v32  ;;  %v492_v49 = vld [vmem:[%s4207_s21] sm:$0xff]  ;;  %v3297_v52 = vld [vmem:[%s5631_s1 + $0x2f8] sm:$0xff]  ;;  %v3296_v54 = vld [vmem:[%s5631_s1 + $0x2f0] sm:$0xff] }
  0x29   : > { %687 = vmatprep.subr.mxu1 %v503_v33  ;;  %587 = vmatpush1.msra.mxu0 %v3220_v34  ;;  %v3267_v55 = vld [vmem:[%s5631_s1 + $0x228] sm:$0xff]  ;;  %v3266_v57 = vld [vmem:[%s5631_s1 + $0x220] sm:$0xff]  ;;  %v3265_v59 = vld [vmem:[%s5631_s1 + $0x218] sm:$0xff] }
  0x2a   : > { %688 = vmatpush1.msra.mxu1 %v502_v35  ;;  %588 = vmatprep.subr.mxu0 %v3219_v36  ;;  %v3295_v56 = vld [vmem:[%s5631_s1 + $0x2e8] sm:$0xff]  ;;  %v3294_v58 = vld [vmem:[%s5631_s1 + $0x2e0] sm:$0xff]  ;;  %v3293_v60 = vld [vmem:[%s5631_s1 + $0x2d8] sm:$0xff] }
  0x2b   : > { %689 = vmatprep.subr.mxu1 %v501_v37  ;;  %589 = vmatpush1.msra.mxu0 %v3218_v38  ;;  %v3264_v61 = vld [vmem:[%s5631_s1 + $0x210] sm:$0xff]  ;;  %v3263_v63 = vld [vmem:[%s5631_s1 + $0x208] sm:$0xff]  ;;  %v3262_v1 = vld [vmem:[%s5631_s1 + $0x200] sm:$0xff] }
  0x2c   : > { %690 = vmatpush1.msra.mxu1 %v500_v39  ;;  %590 = vmatprep.subr.mxu0 %v3217_v40  ;;  %v3292_v62 = vld [vmem:[%s5631_s1 + $0x2d0] sm:$0xff]  ;;  %v3291_v0 = vld [vmem:[%s5631_s1 + $0x2c8] sm:$0xff]  ;;  %v3290_v2 = vld [vmem:[%s5631_s1 + $0x2c0] sm:$0xff] }
  0x2d   : > { %691 = vmatprep.subr.mxu1 %v499_v41  ;;  %591 = vmatpush1.msra.mxu0 %v3216_v42  ;;  %v3261_v3 = vld [vmem:[%s5631_s1 + $0x1f8] sm:$0xff]  ;;  %v3260_v4 = vld [vmem:[%s5631_s1 + $0x1f0] sm:$0xff]  ;;  %v3259_v5 = vld [vmem:[%s5631_s1 + $0x1e8] sm:$0xff] }
  0x2e   : > { %692 = vmatpush1.msra.mxu1 %v498_v43  ;;  %592 = vmatprep.subr.mxu0 %v3215_v44  ;;  %v3289_v6 = vld [vmem:[%s5631_s1 + $0x2b8] sm:$0xff]  ;;  %v521_v7 = vld [vmem:[%s4207_s21 + $0x9] sm:$0xff]  ;;  %v3258_v9 = vld [vmem:[%s5631_s1 + $0x1e0] sm:$0xff] }
  0x2f   : > { %693 = vmatprep.subr.mxu1 %v497_v45  ;;  %593 = vmatpush1.msra.mxu0 %v3214_v46  ;;  %v493_v8 = vld [vmem:[%s4207_s21 + $0x8] sm:$0xff]  ;;  %v3288_v10 = vld [vmem:[%s5631_s1 + $0x2b0] sm:$0xff]  ;;  %v3257_v11 = vld [vmem:[%s5631_s1 + $0x1d8] sm:$0xff] }
  0x30   : > { %694 = vmatpush1.msra.mxu1 %v496_v47  ;;  %727 = vmatprep.mubr.f32.mxu1 %v3928_v50  ;;  %v3287_v12 = vld [vmem:[%s5631_s1 + $0x2a8] sm:$0xff]  ;;  %v3256_v13 = vld [vmem:[%s5631_s1 + $0x1d0] sm:$0xff]  ;;  %v3286_v14 = vld [vmem:[%s5631_s1 + $0x2a0] sm:$0xff] }
  0x31   : > { %3238 = vmatmul.mubr.msk.f32.vlgmr.msra.gmra.mxu0 %vm549_vm0, %v520_v48  ;;  %3242 = vmatmul.mubr.msk.f32.vlgmr.msra.gmra.mxu1 %vm549_vm0, %v492_v49  ;;  %v3255_v15 = vld [vmem:[%s5631_s1 + $0x1c8] sm:$0xff]  ;;  %v3285_v16 = vld [vmem:[%s5631_s1 + $0x298] sm:$0xff]  ;;  %v494_v18 = vld [vmem:[%s4207_s21 + $0x10] sm:$0xff] }
  0x32   : > { %801 = vmatprep.subr.mxu0 %v3269_v51  ;;  %939 = vmatprep.subr.mxu1 %v3297_v52  ;;  %v522_v17 = vld [vmem:[%s4207_s21 + $0x11] sm:$0xff]  ;;  %v3254_v19 = vld [vmem:[%s5631_s1 + $0x1c0] sm:$0xff]  ;;  %v3283_v22 = vld [vmem:[%s5631_s1 + $0x288] sm:$0xff] }
  0x33   : > { %802 = vmatpush1.msra.mxu0 %v3268_v53  ;;  %940 = vmatpush1.msra.mxu1 %v3296_v54  ;;  %v3284_v20 = vld [vmem:[%s5631_s1 + $0x290] sm:$0xff]  ;;  %v3253_v21 = vld [vmem:[%s5631_s1 + $0x1b8] sm:$0xff]  ;;  %v3282_v24 = vld [vmem:[%s5631_s1 + $0x280] sm:$0xff] }
  0x34   : > { %803 = vmatprep.subr.mxu0 %v3267_v55  ;;  %941 = vmatprep.subr.mxu1 %v3295_v56  ;;  %v3252_v23 = vld [vmem:[%s5631_s1 + $0x1b0] sm:$0xff]  ;;  %v3251_v25 = vld [vmem:[%s5631_s1 + $0x1a8] sm:$0xff]  ;;  %v3281_v26 = vld [vmem:[%s5631_s1 + $0x278] sm:$0xff] }
  0x35   : > { %804 = vmatpush1.msra.mxu0 %v3266_v57  ;;  %942 = vmatpush1.msra.mxu1 %v3294_v58  ;;  %v523_v27 = vld [vmem:[%s4207_s21 + $0x19] sm:$0xf]  ;;  %v3250_v29 = vld [vmem:[%s5631_s1 + $0x1a0] sm:$0xff]  ;;  %v3280_v30 = vld [vmem:[%s5631_s1 + $0x270] sm:$0xff] }
  0x36   : > { %805 = vmatprep.subr.mxu0 %v3265_v59  ;;  %943 = vmatprep.subr.mxu1 %v3293_v60  ;;  %v495_v28 = vld [vmem:[%s4207_s21 + $0x18] sm:$0xf]  ;;  %v3279_v32 = vld [vmem:[%s5631_s1 + $0x268] sm:$0xff]  ;;  %v3248_v33 = vld [vmem:[%s5631_s1 + $0x190] sm:$0xff] }
  0x37   : > { %806 = vmatpush1.msra.mxu0 %v3264_v61  ;;  %944 = vmatpush1.msra.mxu1 %v3292_v62  ;;  %v3249_v31 = vld [vmem:[%s5631_s1 + $0x198] sm:$0xff]  ;;  %v3278_v34 = vld [vmem:[%s5631_s1 + $0x260] sm:$0xff]  ;;  %v3247_v35 = vld [vmem:[%s5631_s1 + $0x188] sm:$0xff] }
  0x38   : > { %807 = vmatprep.subr.mxu0 %v3263_v63  ;;  %945 = vmatprep.subr.mxu1 %v3291_v0  ;;  %v3277_v36 = vld [vmem:[%s5631_s1 + $0x258] sm:$0xff]  ;;  %v3246_v37 = vld [vmem:[%s5631_s1 + $0x180] sm:$0xff]  ;;  %v3276_v38 = vld [vmem:[%s5631_s1 + $0x250] sm:$0xff] }
  0x39   : > { %808 = vmatpush1.msra.mxu0 %v3262_v1  ;;  %946 = vmatpush1.msra.mxu1 %v3290_v2  ;;  %v752_v39 = vld [vmem:[%s4207_s21 + $0x2] sm:$0xff]  ;;  %v3325_v41 = vld [vmem:[%s5631_s1 + $0x3b8] sm:$0xff]  ;;  %v3324_v43 = vld [vmem:[%s5631_s1 + $0x3b0] sm:$0xff] }
  0x3a   : > { %809 = vmatprep.subr.mxu0 %v3261_v3  ;;  %632 = vmatprep.mubr.f32.mxu0 %v3928_v50  ;;  %v3275_v40 = vld [vmem:[%s5631_s1 + $0x248] sm:$0xff]  ;;  %v3274_v42 = vld [vmem:[%s5631_s1 + $0x240] sm:$0xff]  ;;  %v3321_v48 = vld [vmem:[%s5631_s1 + $0x398] sm:$0xff] }
  0x3b   : > { %810 = vmatpush1.msra.mxu0 %v3260_v4  ;;  %733 = vmatprep.mubr.f32.mxu1 %v3928_v50  ;;  %v890_v44 = vld [vmem:[%s4207_s21 + $0x3] sm:$0xff]  ;;  %v3320_v49 = vld [vmem:[%s5631_s1 + $0x390] sm:$0xff]  ;;  %v3317_v55 = vld [vmem:[%s5631_s1 + $0x378] sm:$0xff] }
  0x3c   : > { %811 = vmatprep.subr.mxu0 %v3259_v5  ;;  %947 = vmatprep.subr.mxu1 %v3289_v6  ;;  %v3323_v45 = vld [vmem:[%s5631_s1 + $0x3a8] sm:$0xff]  ;;  %v3322_v46 = vld [vmem:[%s5631_s1 + $0x3a0] sm:$0xff]  ;;  %v754_v54 = vld [vmem:[%s4207_s21 + $0x12] sm:$0xff] }
  0x3d   : > { %3239 = vmatmul.mubr.msk.f32.gmra.mxu0 %vm549_vm0, %v521_v7  ;;  %3243 = vmatmul.mubr.msk.f32.gmra.mxu1 %vm549_vm0, %v493_v8  ;;  %v753_v47 = vld [vmem:[%s4207_s21 + $0xa] sm:$0xff]  ;;  %v3318_v53 = vld [vmem:[%s5631_s1 + $0x380] sm:$0xff]  ;;  %v892_v57 = vld [vmem:[%s4207_s21 + $0x13] sm:$0xff] }
  0x3e   : > { %812 = vmatpush1.msra.mxu0 %v3258_v9  ;;  %948 = vmatpush1.msra.mxu1 %v3288_v10  ;;  %v891_v51 = vld [vmem:[%s4207_s21 + $0xb] sm:$0xff]  ;;  %v3314_v59 = vld [vmem:[%s5631_s1 + $0x360] sm:$0xff]  ;;  %v755_v60 = vld [vmem:[%s4207_s21 + $0x1a] sm:$0xf] }
  0x3f   : > { %813 = vmatprep.subr.mxu0 %v3257_v11  ;;  %949 = vmatprep.subr.mxu1 %v3287_v12  ;;  %v3319_v52 = vld [vmem:[%s5631_s1 + $0x388] sm:$0xff]  ;;  %v3316_v56 = vld [vmem:[%s5631_s1 + $0x370] sm:$0xff]  ;;  %v3313_v61 = vld [vmem:[%s5631_s1 + $0x358] sm:$0xff] }
  0x40   : > { %814 = vmatpush1.msra.mxu0 %v3256_v13  ;;  %950 = vmatpush1.msra.mxu1 %v3286_v14  ;;  %v3315_v58 = vld [vmem:[%s5631_s1 + $0x368] sm:$0xff]  ;;  %v3312_v62 = vld [vmem:[%s5631_s1 + $0x350] sm:$0xff]  ;;  %v893_v63 = vld [vmem:[%s4207_s21 + $0x1b] sm:$0xf] }
  0x41   : > { %638 = vmatprep.mubr.f32.mxu0 %v3928_v50  ;;  %739 = vmatprep.mubr.f32.mxu1 %v3928_v50  ;;  %v3311_v0 = vld [vmem:[%s5631_s1 + $0x348] sm:$0xff]  ;;  %v3310_v1 = vld [vmem:[%s5631_s1 + $0x340] sm:$0xff]  ;;  %v3309_v2 = vld [vmem:[%s5631_s1 + $0x338] sm:$0xff] }
  0x42   : > { %815 = vmatprep.subr.mxu0 %v3255_v15  ;;  %951 = vmatprep.subr.mxu1 %v3285_v16  ;;  %v3308_v3 = vld [vmem:[%s5631_s1 + $0x330] sm:$0xff]  ;;  %v3307_v4 = vld [vmem:[%s5631_s1 + $0x328] sm:$0xff]  ;;  %v3306_v5 = vld [vmem:[%s5631_s1 + $0x320] sm:$0xff] }
  0x43   : > { %3240 = vmatmul.mubr.msk.f32.gmra.mxu0 %vm549_vm0, %v522_v17  ;;  %3244 = vmatmul.mubr.msk.f32.gmra.mxu1 %vm549_vm0, %v494_v18  ;;  %v3305_v6 = vld [vmem:[%s5631_s1 + $0x318] sm:$0xff]  ;;  %v3304_v7 = vld [vmem:[%s5631_s1 + $0x310] sm:$0xff]  ;;  %v3303_v8 = vld [vmem:[%s5631_s1 + $0x308] sm:$0xff] }
  0x44   : > { %816 = vmatpush1.msra.mxu0 %v3254_v19  ;;  %952 = vmatpush1.msra.mxu1 %v3284_v20  ;;  %v3302_v9 = vld [vmem:[%s5631_s1 + $0x300] sm:$0xff]  ;;  %v1029_v11 = vld [vmem:[%s4207_s21 + $0xc] sm:$0xff]  ;;  %v1030_v12 = vld [vmem:[%s4207_s21 + $0x14] sm:$0xff] }
  0x45   : > { %817 = vmatprep.subr.mxu0 %v3253_v21  ;;  %953 = vmatprep.subr.mxu1 %v3283_v22  ;;  %v1028_v10 = vld [vmem:[%s4207_s21 + $0x4] sm:$0xff]  ;;  %v1031_v13 = vld [vmem:[%s4207_s21 + $0x1c] sm:$0xf]  ;;  %v1391_v15 = vld [vmem:[%s5634_s4 + $0x70] sm:$0xff] }
  0x46   : > { %818 = vmatpush1.msra.mxu0 %v3252_v23  ;;  %954 = vmatpush1.msra.mxu1 %v3282_v24  ;;  %v1392_v14 = vld [vmem:[%s5634_s4 + $0x78] sm:$0xff]  ;;  %v1390_v16 = vld [vmem:[%s5634_s4 + $0x68] sm:$0xff]  ;;  %v1389_v17 = vld [vmem:[%s5634_s4 + $0x60] sm:$0xff] }
  0x47   : > { %644 = vmatprep.mubr.f32.mxu0 %v3928_v50  ;;  %745 = vmatprep.mubr.f32.mxu1 %v3928_v50  ;;  %v1388_v18 = vld [vmem:[%s5634_s4 + $0x58] sm:$0xff]  ;;  %v1387_v19 = vld [vmem:[%s5634_s4 + $0x50] sm:$0xff]  ;;  %v1386_v20 = vld [vmem:[%s5634_s4 + $0x48] sm:$0xff] }
  0x48   : > { %819 = vmatprep.subr.mxu0 %v3251_v25  ;;  %955 = vmatprep.subr.mxu1 %v3281_v26  ;;  %v1385_v21 = vld [vmem:[%s5634_s4 + $0x40] sm:$0xff]  ;;  %v1384_v22 = vld [vmem:[%s5634_s4 + $0x38] sm:$0xff]  ;;  %v1383_v23 = vld [vmem:[%s5634_s4 + $0x30] sm:$0xff] }
  0x49   : > { %3241 = vmatmul.mubr.msk.f32.gmra.mxu0 %vm549_vm0, %v523_v27  ;;  %3245 = vmatmul.mubr.msk.f32.gmra.mxu1 %vm549_vm0, %v495_v28  ;;  %v1382_v24 = vld [vmem:[%s5634_s4 + $0x28] sm:$0xff]  ;;  %v1381_v25 = vld [vmem:[%s5634_s4 + $0x20] sm:$0xff]  ;;  %v1380_v26 = vld [vmem:[%s5634_s4 + $0x18] sm:$0xff] }
  0x4a   : > { %820 = vmatpush1.msra.mxu0 %v3250_v29  ;;  %956 = vmatpush1.msra.mxu1 %v3280_v30  ;;  %v1379_v27 = vld [vmem:[%s5634_s4 + $0x10] sm:$0xff] }
  0x4b   : > { %821 = vmatprep.subr.mxu0 %v3249_v31  ;;  %957 = vmatprep.subr.mxu1 %v3279_v32 }
  0x4c   : > { %822 = vmatpush1.msra.mxu0 %v3248_v33  ;;  %958 = vmatpush1.msra.mxu1 %v3278_v34 }
  0x4d   : > { %823 = vmatprep.subr.mxu0 %v3247_v35  ;;  %959 = vmatprep.subr.mxu1 %v3277_v36 }
  0x4e   : > { %824 = vmatpush1.msra.mxu0 %v3246_v37  ;;  %857 = vmatprep.mubr.f32.mxu0 %v3928_v50 }
  0x4f   : > { %960 = vmatpush1.msra.mxu1 %v3276_v38  ;;  %3270 = vmatmul.mubr.msk.f32.vlgmr.msra.gmra.mxu0 %vm549_vm0, %v752_v39 }
  0x50   : > { %961 = vmatprep.subr.mxu1 %v3275_v40  ;;  %1077 = vmatprep.subr.mxu0 %v3325_v41 }
  0x51   : > { %962 = vmatpush1.msra.mxu1 %v3274_v42  ;;  %995 = vmatprep.mubr.f32.mxu1 %v3928_v50 }
  0x52   : > { %1078 = vmatpush1.msra.mxu0 %v3324_v43  ;;  %3298 = vmatmul.mubr.msk.f32.vlgmr.msra.gmra.mxu1 %vm549_vm0, %v890_v44 }
  0x53   : > { %1079 = vmatprep.subr.mxu0 %v3323_v45  ;;  %863 = vmatprep.mubr.f32.mxu0 %v3928_v50 }
  0x54   : > { %1080 = vmatpush1.msra.mxu0 %v3322_v46  ;;  %1001 = vmatprep.mubr.f32.mxu1 %v3928_v50 }
  0x55   : > { %3271 = vmatmul.mubr.msk.f32.gmra.mxu0 %vm549_vm0, %v753_v47  ;;  %1081 = vmatprep.subr.mxu0 %v3321_v48 }
  0x56   : > { %1082 = vmatpush1.msra.mxu0 %v3320_v49  ;;  %3299 = vmatmul.mubr.msk.f32.gmra.mxu1 %vm549_vm0, %v891_v51 }
  0x57   : > { %1083 = vmatprep.subr.mxu0 %v3319_v52  ;;  %869 = vmatprep.mubr.f32.mxu0 %v3928_v50 }
  0x58   : > { %1084 = vmatpush1.msra.mxu0 %v3318_v53  ;;  %1007 = vmatprep.mubr.f32.mxu1 %v3928_v50 }
  0x59   : > { %3272 = vmatmul.mubr.msk.f32.gmra.mxu0 %vm549_vm0, %v754_v54  ;;  %1085 = vmatprep.subr.mxu0 %v3317_v55 }
  0x5a   : > { %1086 = vmatpush1.msra.mxu0 %v3316_v56  ;;  %3300 = vmatmul.mubr.msk.f32.gmra.mxu1 %vm549_vm0, %v892_v57 }
  0x5b   : > { %1087 = vmatprep.subr.mxu0 %v3315_v58  ;;  %875 = vmatprep.mubr.f32.mxu0 %v3928_v50 }
  0x5c   : > { %1088 = vmatpush1.msra.mxu0 %v3314_v59  ;;  %1013 = vmatprep.mubr.f32.mxu1 %v3928_v50 }
  0x5d   : > { %3273 = vmatmul.mubr.msk.f32.gmra.mxu0 %vm549_vm0, %v755_v60  ;;  %1089 = vmatprep.subr.mxu0 %v3313_v61  ;;  %v1168_v60 = vlaneseq }
  0x5e   : > { %1090 = vmatpush1.msra.mxu0 %v3312_v62  ;;  %3301 = vmatmul.mubr.msk.f32.gmra.mxu1 %vm549_vm0, %v893_v63 }
  0x5f   : > { %1091 = vmatprep.subr.mxu0 %v3311_v0  ;;  %1133 = vmatprep.mubr.f32.mxu0 %v3928_v50 }
  0x60   : > { %1092 = vmatpush1.msra.mxu0 %v3310_v1  ;;  %1274 = vmatprep.mubr.f32.mxu1 %v3928_v50 }
  0x61   : > { %1093 = vmatprep.subr.mxu0 %v3309_v2 }
  0x62   : > { %1094 = vmatpush1.msra.mxu0 %v3308_v3  ;;  %v4549_v3 = vshrl.u32 %v1168_v60, 7 }
  0x63   : > { %1095 = vmatprep.subr.mxu0 %v3307_v4 }
  0x64   : > { %1096 = vmatpush1.msra.mxu0 %v3306_v5 }
  0x65   : > { %1097 = vmatprep.subr.mxu0 %v3305_v6 }
  0x66   : > { %1098 = vmatpush1.msra.mxu0 %v3304_v7 }
  0x67   : > { %1099 = vmatprep.subr.mxu0 %v3303_v8 }
  0x68   : > { %1100 = vmatpush1.msra.mxu0 %v3302_v9 }
  0x69   : > { %3326 = vmatmul.mubr.msk.f32.vlgmr.msra.gmra.mxu0 %vm549_vm0, %v1028_v10  ;;  %1405 = vmatprep.subr.mxu0 %v3928_v50 }
  0x6a   : > { %1139 = vmatprep.mubr.f32.mxu0 %v3928_v50  ;;  %1406 = vmatpush1.msra.mxu0 %v1392_v14 }
  0x6b   : > { %1407 = vmatprep.subr.mxu0 %v3928_v50 }
  0x6c   : > { %1408 = vmatpush1.msra.mxu0 %v1391_v15 }
  0x6d   : > { %3327 = vmatmul.mubr.msk.f32.gmra.mxu0 %vm549_vm0, %v1029_v11  ;;  %1409 = vmatprep.subr.mxu0 %v3928_v50 }
  0x6e   : > { %1145 = vmatprep.mubr.f32.mxu0 %v3928_v50  ;;  %1410 = vmatpush1.msra.mxu0 %v1390_v16 }
  0x6f   : > { %1411 = vmatprep.subr.mxu0 %v3928_v50 }
  0x70   : > { %1412 = vmatpush1.msra.mxu0 %v1389_v17 }
  0x71   : > { %3328 = vmatmul.mubr.msk.f32.gmra.mxu0 %vm549_vm0, %v1030_v12  ;;  %1413 = vmatprep.subr.mxu0 %v3928_v50 }
  0x72   : > { %1151 = vmatprep.mubr.f32.mxu0 %v3928_v50  ;;  %1414 = vmatpush1.msra.mxu0 %v1388_v18  ;;  %v1170_v18 = vsub.s32 0, %v4549_v3 }
  0x73   : > { %1415 = vmatprep.subr.mxu0 %v3928_v50 }
  0x74   : > { %1416 = vmatpush1.msra.mxu0 %v1387_v19 }
  0x75   : > { %3329 = vmatmul.mubr.msk.f32.gmra.mxu0 %vm549_vm0, %v1031_v13  ;;  %1417 = vmatprep.subr.mxu0 %v3928_v50 }
  0x76   : > { %1418 = vmatpush1.msra.mxu0 %v1386_v20 }
  0x77   : > { %1419 = vmatprep.subr.mxu0 %v3928_v50 }
  0x78   : > { %1420 = vmatpush1.msra.mxu0 %v1385_v21 }
  0x79   : > { %1421 = vmatprep.subr.mxu0 %v3928_v50 }
  0x7a   : > { %1422 = vmatpush1.msra.mxu0 %v1384_v22 }
  0x7b   : > { %1423 = vmatprep.subr.mxu0 %v3928_v50 }
  0x7c   : > { %1424 = vmatpush1.msra.mxu0 %v1383_v23  ;;  %v1166_v23 = vld [vmem:[%s5632_s2] sm:$0x3] }
  0x7d   : > { %1425 = vmatprep.subr.mxu0 %v3928_v50 }
  0x7e   : > { %1426 = vmatpush1.msra.mxu0 %v1382_v24  ;;  %v1174_v24 = vsub.s32 1, %v4549_v3  ;;  %v2184_v3 = vld [vmem:[%s5637_s7] sm:$0x1f] }
  0x7f   : > { %1427 = vmatprep.subr.mxu0 %v3928_v50 }
  0x80   : > { %1428 = vmatpush1.msra.mxu0 %v1381_v25 }
  0x81   : > { %1429 = vmatprep.subr.mxu0 %v3928_v50 }
  0x82   : > { %1430 = vmatpush1.msra.mxu0 %v1380_v26 }
  0x83   : > { %1431 = vmatprep.subr.mxu0 %v3928_v50 }
  0x84   : > { %1432 = vmatpush1.msra.mxu0 %v1379_v27 }
  0x85   : > { %1433 = vmatprep.subr.mxu0 %v3928_v50 }
  0xf1   : > { %v628_v28 = vpop.f32.mrf.mxu0  ;;  %v729_v29 = vpop.f32.mrf.mxu1 }
  0xf2   : > { %v730_v15 = vadd.f32 %v729_v29, %v628_v28 }
  0xf3   : > { %v630_v30 = vpop.f32.mrf.mxu0  ;;  %v731_v32 = vpop.f32.mrf.mxu1 }
  0xf4   : > { %v732_v12 = vadd.f32 %v731_v32, %v630_v30 }
  0xfd   : > { %v634_v31 = vpop.f32.mrf.mxu0  ;;  %v735_v34 = vpop.f32.mrf.mxu1 }
  0xfe   : > { %v736_v9 = vadd.f32 %v735_v34, %v634_v31 }
  0xff   : > { %v636_v33 = vpop.f32.mrf.mxu0  ;;  %v737_v36 = vpop.f32.mrf.mxu1 }
 0x100   : > { %v738_v5 = vadd.f32 %v737_v36, %v636_v33  ;;  %v1171_v33 = vrot.slane %v1166_v23, %v1170_v18 }
 0x103   : > { %v640_v35 = vpop.f32.mrf.mxu0  ;;  %v741_v38 = vpop.f32.mrf.mxu1 }
 0x104   : > { %v742_v1 = vadd.f32 %v741_v38, %v640_v35 }
 0x105   : > { %v642_v37 = vpop.f32.mrf.mxu0  ;;  %v743_v41 = vpop.f32.mrf.mxu1 }
 0x106   : > { %v744_v63 = vadd.f32 %v743_v41, %v642_v37  ;;  %v1175_v37 = vrot.slane %v1166_v23, %v1174_v24  ;;  %v1396_v23 = vld [vmem:[%s5634_s4 + $0x98] sm:$0xff] }
 0x109   : > { %v646_v39 = vpop.f32.mrf.mxu0  ;;  %v747_v43 = vpop.f32.mrf.mxu1 }
 0x10a   : > { %v748_v0 = vadd.f32 %v747_v43, %v646_v39 }
 0x10b   : > { %v648_v40 = vpop.f32.mrf.mxu0  ;;  %v749_v45 = vpop.f32.mrf.mxu1 }
 0x10c   : > { %v750_v6 = vadd.f32 %v749_v45, %v648_v40 }
 0x10f   : > { %v859_v42 = vpop.f32.mrf.mxu0 }
 0x110   : > { %v882_v25 = vadd.f32 %v859_v42, %v730_v15  ;;  %v3344_v15 = vld [vmem:[%s5634_s4 + $0xb8] sm:$0xff] }
 0x111   : > { %v861_v44 = vpop.f32.mrf.mxu0 }
 0x112   : > { %v997_v47 = vpop.f32.mrf.mxu1  ;;  %v883_v20 = vadd.f32 %v861_v44, %v732_v12  ;;  %v3347_v12 = vld [vmem:[%s5634_s4 + $0xd0] sm:$0xff] }
 0x113   : > { %v1020_v40 = vadd.f32 %v997_v47, %v882_v25  ;;  %v3361_v25 = vld [vmem:[%s5634_s4 + $0x140] sm:$0xff] }
 0x114   : > { %v999_v49 = vpop.f32.mrf.mxu1 }
 0x115   : > { %v865_v46 = vpop.f32.mrf.mxu0  ;;  %v1021_v36 = vadd.f32 %v999_v49, %v883_v20  ;;  %v3342_v20 = vld [vmem:[%s5634_s4 + $0xa8] sm:$0xff] }
 0x116   : > { %v1003_v52 = vpop.f32.mrf.mxu1  ;;  %v884_v16 = vadd.f32 %v865_v46, %v736_v9  ;;  %v3350_v9 = vld [vmem:[%s5634_s4 + $0xe8] sm:$0xff] }
 0x117   : > { %v867_v48 = vpop.f32.mrf.mxu0 }
 0x118   : > { %v1005_v54 = vpop.f32.mrf.mxu1  ;;  %v885_v13 = vadd.f32 %v867_v48, %v738_v5  ;;  %v1022_v32 = vadd.f32 %v1003_v52, %v884_v16  ;;  %v3354_v5 = vld [vmem:[%s5634_s4 + $0x108] sm:$0xff] }
 0x119   : > { %v871_v51 = vpop.f32.mrf.mxu0  ;;  %v1378_v16 = vld [vmem:[%s5634_s4 + $0x8] sm:$0xff] }
 0x11a   : > { %v1009_v56 = vpop.f32.mrf.mxu1  ;;  %v886_v10 = vadd.f32 %v871_v51, %v742_v1  ;;  %v1023_v30 = vadd.f32 %v1005_v54, %v885_v13  ;;  %v3356_v1 = vld [vmem:[%s5634_s4 + $0x118] sm:$0xff]  ;;  %v3346_v13 = vld [vmem:[%s5634_s4 + $0xc8] sm:$0xff]  ;;  %1434 = vmatpush1.msra.mxu0 %v1378_v16  ;;  %v3371_v16 = vld [vmem:[%s5635_s5 + $0xe0] sm:$0xff] }
 0x11b   : > { %v873_v53 = vpop.f32.mrf.mxu0  ;;  %1435 = vmatprep.subr.mxu0 %v3928_v50 }
 0x11c   : > { %v1011_v59 = vpop.f32.mrf.mxu1  ;;  %v887_v7 = vadd.f32 %v873_v53, %v744_v63  ;;  %v1024_v26 = vadd.f32 %v1009_v56, %v886_v10  ;;  %v3334_v63 = vld [vmem:[%s5633_s3 + $0x10] sm:$0xff]  ;;  %v3349_v10 = vld [vmem:[%s5634_s4 + $0xe0] sm:$0xff] }
 0x11d   : > { %v877_v55 = vpop.f32.mrf.mxu0 }
 0x11e   : > { %v1015_v2 = vpop.f32.mrf.mxu1  ;;  %v888_v8 = vadd.f32 %v877_v55, %v748_v0  ;;  %v1025_v21 = vadd.f32 %v1011_v59, %v887_v7  ;;  %v3357_v0 = vld [vmem:[%s5634_s4 + $0x120] sm:$0xff]  ;;  %v3352_v7 = vld [vmem:[%s5634_s4 + $0xf8] sm:$0xff] }
 0x11f   : > { %v879_v57 = vpop.f32.mrf.mxu0 }
 0x120   : > { %v889_v14 = vadd.f32 %v879_v57, %v750_v6  ;;  %v1017_v17 = vpop.f32.mrf.mxu1  ;;  %v1026_v22 = vadd.f32 %v1015_v2, %v888_v8  ;;  %v3335_v2 = vld [vmem:[%s5633_s3 + $0x18] sm:$0x3f]  ;;  %v3353_v6 = vld [vmem:[%s5634_s4 + $0x100] sm:$0xff]  ;;  %v3351_v8 = vld [vmem:[%s5634_s4 + $0xf0] sm:$0xff] }
 0x122   : > { %v1027_v31 = vadd.f32 %v1017_v17, %v889_v14  ;;  %v3345_v14 = vld [vmem:[%s5634_s4 + $0xc0] sm:$0xff]  ;;  %v3343_v17 = vld [vmem:[%s5634_s4 + $0xb0] sm:$0xff] }
 0x129   : > { %v1135_v58 = vpop.f32.mrf.mxu0 }
 0x12a   : > { %v1158_v46 = vadd.f32 %v1135_v58, %v1020_v40 }
 0x12b   : > { %v1137_v61 = vpop.f32.mrf.mxu0 }
 0x12c   : > { %v1159_v43 = vadd.f32 %v1137_v61, %v1021_v36  ;;  %v1178_v56 = vadd.f32 %v1171_v33, %v1158_v46  ;;  %v1194_v61 = vld [vmem:[%s5633_s3] sm:$0xff]  ;;  %v3384_v46 = vld [vmem:[%s5635_s5 + $0x148] sm:$0xff] }
 0x12d   : > { %v1141_v62 = vpop.f32.mrf.mxu0 }
 0x12e   : > { %v1160_v41 = vadd.f32 %v1141_v62, %v1022_v32  ;;  %v1179_v55 = vadd.f32 %v1175_v37, %v1159_v43  ;;  %v1186_v58 = vmax.f32 %v1178_v56, 0.0  ;;  %v1195_v62 = vld [vmem:[%s5633_s3 + $0x8] sm:$0x3f]  ;;  %v1605_v43 = vld [vmem:[%s5635_s5 + $0xa0] sm:$0xf] }
 0x12f   : > { %v1143_v4 = vpop.f32.mrf.mxu0  ;;  %v1606_v32 = vld [vmem:[%s5635_s5 + $0xa8] sm:$0xf]  ;;  %v1601_v56 = vld [vmem:[%s5635_s5 + $0x80] sm:$0xff] }
 0x130   : > { %v1161_v38 = vadd.f32 %v1143_v4, %v1023_v30  ;;  %v1180_v53 = vadd.f32 %v1171_v33, %v1160_v41  ;;  %v1187_v60 = vmax.f32 %v1179_v55, 0.0  ;;  %v3355_v4 = vld [vmem:[%s5634_s4 + $0x110] sm:$0xff]  ;;  %v1394_v30 = vld [vmem:[%s5634_s4 + $0x88] sm:$0xff] }
 0x131   : > { %v1147_v11 = vpop.f32.mrf.mxu0  ;;  %v1602_v55 = vld [vmem:[%s5635_s5 + $0x88] sm:$0xff] }
 0x132   : > { %v1162_v34 = vadd.f32 %v1147_v11, %v1024_v26  ;;  %v1181_v51 = vadd.f32 %v1175_v37, %v1161_v38  ;;  %v1188_v59 = vmax.f32 %v1180_v53, 0.0  ;;  %v3348_v11 = vld [vmem:[%s5634_s4 + $0xd8] sm:$0xff]  ;;  %v1395_v26 = vld [vmem:[%s5634_s4 + $0x90] sm:$0xff] }
 0x133   : > { %v1149_v19 = vpop.f32.mrf.mxu0  ;;  %v1603_v53 = vld [vmem:[%s5635_s5 + $0x90] sm:$0xff] }
 0x134   : > { %v1163_v28 = vadd.f32 %v1149_v19, %v1025_v21  ;;  %v1182_v48 = vadd.f32 %v1171_v33, %v1162_v34  ;;  %v1189_v47 = vmax.f32 %v1181_v51, 0.0  ;;  %v1377_v19 = vld [vmem:[%s5634_s4] sm:$0xff] }
 0x135   : > { %v1153_v27 = vpop.f32.mrf.mxu0  ;;  %1436 = vmatpush1.msra.mxu0 %v1377_v19  ;;  %v1397_v21 = vld [vmem:[%s5634_s4 + $0xa0] sm:$0xff]  ;;  %v3370_v19 = vld [vmem:[%s5635_s5 + $0xd8] sm:$0xff] }
 0x136   : > { %v1164_v29 = vadd.f32 %v1153_v27, %v1026_v22  ;;  %v1183_v44 = vadd.f32 %v1175_v37, %v1163_v28  ;;  %v1190_v57 = vmax.f32 %v1182_v48, 0.0  ;;  %1459 = vmatprep.subr.mxu0 %v3928_v50  ;;  %v3362_v22 = vld [vmem:[%s5634_s4 + $0x148] sm:$0xff]  ;;  %v3360_v27 = vld [vmem:[%s5634_s4 + $0x138] sm:$0xff]  ;;  %v1393_v28 = vld [vmem:[%s5634_s4 + $0x80] sm:$0xff] }
 0x137   : > { %v1155_v35 = vpop.f32.mrf.mxu0  ;;  %1460 = vmatpush2.msra.mxu0 %v1397_v21  ;;  %v3369_v21 = vld [vmem:[%s5635_s5 + $0xd0] sm:$0xff] }
 0x138   : > { %v1165_v39 = vadd.f32 %v1155_v35, %v1027_v31  ;;  %v1184_v42 = vadd.f32 %v1171_v33, %v1164_v29  ;;  %v1191_v49 = vmax.f32 %v1183_v44, 0.0  ;;  %1461 = vmatprep.subr.mxu0 %v3928_v50  ;;  %v3359_v31 = vld [vmem:[%s5634_s4 + $0x130] sm:$0xff]  ;;  %v3358_v29 = vld [vmem:[%s5634_s4 + $0x128] sm:$0xff]  ;;  %v3386_v33 = vld [vmem:[%s5635_s5 + $0x158] sm:$0xf] }
 0x139   : > { %1462 = vmatpush2.msra.mxu0 %v1396_v23  ;;  %v3385_v44 = vld [vmem:[%s5635_s5 + $0x150] sm:$0xf]  ;;  %v3368_v23 = vld [vmem:[%s5635_s5 + $0xc8] sm:$0xff] }
 0x13a   : > { %v1185_v45 = vadd.f32 %v1175_v37, %v1165_v39  ;;  %v1192_v54 = vmax.f32 %v1184_v42, 0.0  ;;  %1463 = vmatprep.subr.mxu0 %v3928_v50 }
 0x13b   : > { %1464 = vmatpush2.msra.mxu0 %v1395_v26  ;;  %v3367_v26 = vld [vmem:[%s5635_s5 + $0xc0] sm:$0xff] }
 0x13c   : > { %v1193_v52 = vmax.f32 %v1185_v45, 0.0  ;;  %1465 = vmatprep.subr.mxu0 %v3928_v50  ;;  %v1604_v45 = vld [vmem:[%s5635_s5 + $0x98] sm:$0xff] }
 0x13d   : > { %1466 = vmatpush2.msra.mxu0 %v1394_v30  ;;  %v3365_v30 = vld [vmem:[%s5635_s5 + $0xb0] sm:$0xff] }
 0x13e   : > { %3330 = vmatprep.subr.msk.mxu1 %vm1203_vm1, %v1193_v52  ;;  %1467 = vmatprep.subr.mxu0 %v3928_v50 }
 0x13f   : > { %3331 = vmatpush1.msk.msra.mxu1 %vm1203_vm1, %v1192_v54  ;;  %1468 = vmatpush2.msra.mxu0 %v1393_v28 }
 0x140   : > { %1236 = vmatprep.subr.mxu1 %v1191_v49  ;;  %3387 = vmatprep.subr.msk.mxu0 %vm1203_vm1, %v3386_v33 }
 0x141   : > { %1237 = vmatpush1.msra.mxu1 %v1190_v57 }
 0x142   : > { %1238 = vmatprep.subr.mxu1 %v1189_v47 }
 0x143   : > { %1239 = vmatpush1.msra.mxu1 %v1188_v59 }
 0x144   : > { %1240 = vmatprep.subr.mxu1 %v1187_v60 }
 0x145   : > { %1241 = vmatpush1.msra.mxu1 %v1186_v58 }
 0x146   : > { %3332 = vmatmul.mubr.msk.f32.vlgmr.msra.gmra.mxu1 %vm1196_vm2, %v1194_v61  ;;  %3336 = vmatprep.subr.msk.mxu1 %vm1203_vm1, %v1193_v52  ;;  %v1598_v61 = vld [vmem:[%s5635_s5 + $0x68] sm:$0xff] }
 0x147   : > { %3337 = vmatpush1.msk.msra.mxu1 %vm1203_vm1, %v1192_v54  ;;  %1280 = vmatprep.mubr.f32.mxu1 %v3928_v50  ;;  %v3383_v54 = vld [vmem:[%s5635_s5 + $0x140] sm:$0xff] }
 0x148   : > { %1322 = vmatprep.subr.mxu1 %v1191_v49  ;;  %v3382_v49 = vld [vmem:[%s5635_s5 + $0x138] sm:$0xff] }
 0x149   : > { %1323 = vmatpush1.msra.mxu1 %v1190_v57  ;;  %v3381_v57 = vld [vmem:[%s5635_s5 + $0x130] sm:$0xff] }
 0x14a   : > { %3333 = vmatmul.mubr.msk.f32.gmra.mxu1 %vm1196_vm2, %v1195_v62  ;;  %1324 = vmatprep.subr.mxu1 %v1189_v47  ;;  %v1600_v47 = vld [vmem:[%s5635_s5 + $0x78] sm:$0xff]  ;;  %v1597_v62 = vld [vmem:[%s5635_s5 + $0x60] sm:$0xff] }
 0x14b   : > { %1325 = vmatpush1.msra.mxu1 %v1188_v59  ;;  %1360 = vmatprep.mubr.f32.mxu1 %v3928_v50  ;;  %v3380_v59 = vld [vmem:[%s5635_s5 + $0x128] sm:$0xff] }
 0x14c   : > { %1326 = vmatprep.subr.mxu1 %v1187_v60  ;;  %v1599_v60 = vld [vmem:[%s5635_s5 + $0x70] sm:$0xff] }
 0x14d   : > { %1327 = vmatpush1.msra.mxu1 %v1186_v58  ;;  %v3379_v58 = vld [vmem:[%s5635_s5 + $0x120] sm:$0xff] }
 0x14e   : > { %3338 = vmatmul.mubr.msk.f32.vlgmr.msra.gmra.mxu1 %vm1196_vm2, %v3334_v63  ;;  %1502 = vmatprep.subr.mxu1 %v3928_v50  ;;  %v1596_v63 = vld [vmem:[%s5635_s5 + $0x58] sm:$0xff] }
 0x14f   : > { %1366 = vmatprep.mubr.f32.mxu1 %v3928_v50  ;;  %1503 = vmatpush1.msra.mxu1 %v3357_v0  ;;  %v1595_v0 = vld [vmem:[%s5635_s5 + $0x50] sm:$0xff] }
 0x150   : > { %1504 = vmatprep.subr.mxu1 %v3928_v50 }
 0x151   : > { %1505 = vmatpush1.msra.mxu1 %v3356_v1  ;;  %v3378_v1 = vld [vmem:[%s5635_s5 + $0x118] sm:$0xff] }
 0x152   : > { %3339 = vmatmul.mubr.msk.f32.gmra.mxu1 %vm1196_vm2, %v3335_v2  ;;  %1506 = vmatprep.subr.mxu1 %v3928_v50  ;;  %v1594_v2 = vld [vmem:[%s5635_s5 + $0x48] sm:$0xff] }
 0x153   : > { %1507 = vmatpush1.msra.mxu1 %v3355_v4  ;;  %v3377_v4 = vld [vmem:[%s5635_s5 + $0x110] sm:$0xff] }
 0x154   : > { %1508 = vmatprep.subr.mxu1 %v3928_v50 }
 0x155   : > { %1509 = vmatpush1.msra.mxu1 %v3354_v5  ;;  %v1593_v5 = vld [vmem:[%s5635_s5 + $0x40] sm:$0xff] }
 0x156   : > { %1510 = vmatprep.subr.mxu1 %v3928_v50 }
 0x157   : > { %1511 = vmatpush1.msra.mxu1 %v3353_v6  ;;  %v3376_v6 = vld [vmem:[%s5635_s5 + $0x108] sm:$0xff] }
 0x158   : > { %1512 = vmatprep.subr.mxu1 %v3928_v50 }
 0x159   : > { %1513 = vmatpush1.msra.mxu1 %v3352_v7  ;;  %v1592_v7 = vld [vmem:[%s5635_s5 + $0x38] sm:$0xff] }
 0x15a   : > { %1514 = vmatprep.subr.mxu1 %v3928_v50 }
 0x15b   : > { %1515 = vmatpush1.msra.mxu1 %v3351_v8  ;;  %v3375_v8 = vld [vmem:[%s5635_s5 + $0x100] sm:$0xff] }
 0x15c   : > { %1516 = vmatprep.subr.mxu1 %v3928_v50 }
 0x15d   : > { %1517 = vmatpush1.msra.mxu1 %v3350_v9  ;;  %v1591_v9 = vld [vmem:[%s5635_s5 + $0x30] sm:$0xff] }
 0x15e   : > { %1518 = vmatprep.subr.mxu1 %v3928_v50 }
 0x15f   : > { %1519 = vmatpush1.msra.mxu1 %v3349_v10  ;;  %v3374_v10 = vld [vmem:[%s5635_s5 + $0xf8] sm:$0xff] }
 0x160   : > { %1520 = vmatprep.subr.mxu1 %v3928_v50 }
 0x161   : > { %1521 = vmatpush1.msra.mxu1 %v3348_v11  ;;  %v1590_v11 = vld [vmem:[%s5635_s5 + $0x28] sm:$0xff] }
 0x162   : > { %1522 = vmatprep.subr.mxu1 %v3928_v50 }
 0x163   : > { %1523 = vmatpush1.msra.mxu1 %v3347_v12  ;;  %v3373_v12 = vld [vmem:[%s5635_s5 + $0xf0] sm:$0xff] }
 0x164   : > { %1524 = vmatprep.subr.mxu1 %v3928_v50 }
 0x165   : > { %1525 = vmatpush1.msra.mxu1 %v3346_v13  ;;  %v1589_v13 = vld [vmem:[%s5635_s5 + $0x20] sm:$0xff] }
 0x166   : > { %1526 = vmatprep.subr.mxu1 %v3928_v50 }
 0x167   : > { %1527 = vmatpush1.msra.mxu1 %v3345_v14  ;;  %v3372_v14 = vld [vmem:[%s5635_s5 + $0xe8] sm:$0xff] }
 0x168   : > { %1528 = vmatprep.subr.mxu1 %v3928_v50 }
 0x169   : > { %1529 = vmatpush1.msra.mxu1 %v3344_v15  ;;  %v1588_v15 = vld [vmem:[%s5635_s5 + $0x18] sm:$0xff] }
 0x16a   : > { %1530 = vmatprep.subr.mxu1 %v3928_v50 }
 0x16b   : > { %1531 = vmatpush1.msra.mxu1 %v3343_v17  ;;  %v1587_v17 = vld [vmem:[%s5635_s5 + $0x10] sm:$0xff] }
 0x16c   : > { %1532 = vmatprep.subr.mxu1 %v3928_v50 }
 0x16d   : > { %1533 = vmatpush1.msra.mxu1 %v3342_v20  ;;  %v1586_v20 = vld [vmem:[%s5635_s5 + $0x8] sm:$0xff] }
 0x16e   : > { %1556 = vmatprep.subr.mxu1 %v3928_v50 }
 0x16f   : > { %1557 = vmatpush2.msra.mxu1 %v3362_v22  ;;  %v1585_v22 = vld [vmem:[%s5635_s5] sm:$0xff] }
 0x170   : > { %1558 = vmatprep.subr.mxu1 %v3928_v50 }
 0x171   : > { %1559 = vmatpush2.msra.mxu1 %v3361_v25  ;;  %v3442_v25 = vld [vmem:[%s5635_s5 + $0x2b8] sm:$0xf] }
 0x172   : > { %1560 = vmatprep.subr.mxu1 %v3928_v50 }
 0x173   : > { %1561 = vmatpush2.msra.mxu1 %v3360_v27  ;;  %v3366_v27 = vld [vmem:[%s5635_s5 + $0xb8] sm:$0xff] }
 0x174   : > { %1562 = vmatprep.subr.mxu1 %v3928_v50 }
 0x175   : > { %1563 = vmatpush2.msra.mxu1 %v3359_v31  ;;  %v3416_v31 = vld [vmem:[%s5635_s5 + $0x208] sm:$0xf] }
 0x176   : > { %1564 = vmatprep.subr.mxu1 %v3928_v50 }
 0x177   : > { %1565 = vmatpush2.msra.mxu1 %v3358_v29 }
 0x178   : > { %3391 = vmatprep.subr.msk.mxu1 %vm1203_vm1, %v1606_v32 }
 0x206   : > { %v1276_v34 = vpop.f32.mrf.mxu1 }
 0x208   : > { %v1278_v35 = vpop.f32.mrf.mxu1 }
 0x20a   : > { %v1282_v36 = vpop.f32.mrf.mxu1 }
 0x20c   : > { %v1284_v37 = vpop.f32.mrf.mxu1 }
 0x20e   : > { %v1362_v38 = vpop.f32.mrf.mxu1 }
 0x20f   : > { %v1373_v41 = vmax.f32 %v1276_v34, %v1362_v38 }
 0x210   : > { %v1364_v39 = vpop.f32.mrf.mxu1 }
 0x211   : > { %v1374_v40 = vmax.f32 %v1278_v35, %v1364_v39 }
 0x212   : > { %v1368_v42 = vpop.f32.mrf.mxu1 }
 0x213   : > { %3340 = vmatprep.mubr.msk.f32.mxu0 %vm1398_vm3, %v1374_v40  ;;  %3363 = vmatprep.mubr.msk.f32.mxu1 %vm1398_vm3, %v1374_v40  ;;  %v1375_v52 = vmax.f32 %v1282_v36, %v1368_v42  ;;  %v3441_v40 = vld [vmem:[%s5635_s5 + $0x2b0] sm:$0xf]  ;;  %v3440_v42 = vld [vmem:[%s5635_s5 + $0x2a8] sm:$0xff] }
 0x214   : > { %v1370_v48 = vpop.f32.mrf.mxu1  ;;  %1470 = vmatmul.mubr.f32.vlgmr.msra.gmra.mxu0 %v1373_v41  ;;  %1567 = vmatmul.mubr.f32.vlgmr.msra.gmra.mxu1 %v1373_v41 }
 0x215   : > { %v1376_v51 = vmax.f32 %v1284_v37, %v1370_v48  ;;  %3392 = vmatpush1.msk.msra.mxu1 %vm1203_vm1, %v1605_v43  ;;  %3388 = vmatpush1.msk.msra.mxu0 %vm1203_vm1, %v3385_v44  ;;  %v3439_v43 = vld [vmem:[%s5635_s5 + $0x2a0] sm:$0xff]  ;;  %v3438_v44 = vld [vmem:[%s5635_s5 + $0x298] sm:$0xff] }
 0x216   : > { %1745 = vmatprep.subr.mxu1 %v1604_v45  ;;  %1656 = vmatprep.subr.mxu0 %v3384_v46  ;;  %v3415_v45 = vld [vmem:[%s5635_s5 + $0x200] sm:$0xf]  ;;  %v3437_v46 = vld [vmem:[%s5635_s5 + $0x290] sm:$0xff] }
 0x217   : > { %3341 = vmatprep.mubr.msk.f32.mxu0 %vm1398_vm3, %v1376_v51  ;;  %3364 = vmatprep.mubr.msk.f32.mxu1 %vm1398_vm3, %v1376_v51 }
 0x218   : > { %1475 = vmatmul.mubr.f32.gmra.mxu0 %v1375_v52  ;;  %1572 = vmatmul.mubr.f32.gmra.mxu1 %v1375_v52  ;;  %v3414_v52 = vld [vmem:[%s5635_s5 + $0x1f8] sm:$0xff] }
 0x219   : > { %1746 = vmatpush1.msra.mxu1 %v1603_v53  ;;  %1657 = vmatpush1.msra.mxu0 %v3383_v54  ;;  %v3436_v53 = vld [vmem:[%s5635_s5 + $0x288] sm:$0xff]  ;;  %v3413_v54 = vld [vmem:[%s5635_s5 + $0x1f0] sm:$0xff] }
 0x21a   : > { %1747 = vmatprep.subr.mxu1 %v1602_v55  ;;  %1658 = vmatprep.subr.mxu0 %v3382_v49  ;;  %v3435_v55 = vld [vmem:[%s5635_s5 + $0x280] sm:$0xff]  ;;  %v3412_v49 = vld [vmem:[%s5635_s5 + $0x1e8] sm:$0xff] }
 0x21b   : > { %1748 = vmatpush1.msra.mxu1 %v1601_v56  ;;  %1659 = vmatpush1.msra.mxu0 %v3381_v57  ;;  %v3434_v56 = vld [vmem:[%s5635_s5 + $0x278] sm:$0xff]  ;;  %v3433_v57 = vld [vmem:[%s5635_s5 + $0x270] sm:$0xff] }
 0x21c   : > { %1749 = vmatprep.subr.mxu1 %v1600_v47  ;;  %1660 = vmatprep.subr.mxu0 %v3380_v59  ;;  %v3411_v47 = vld [vmem:[%s5635_s5 + $0x1e0] sm:$0xff]  ;;  %v3432_v59 = vld [vmem:[%s5635_s5 + $0x268] sm:$0xff] }
 0x21d   : > { %1750 = vmatpush1.msra.mxu1 %v1599_v60  ;;  %1661 = vmatpush1.msra.mxu0 %v3379_v58  ;;  %v3410_v58 = vld [vmem:[%s5635_s5 + $0x1d8] sm:$0xff] }
 0x21e   : > { %1751 = vmatprep.subr.mxu1 %v1598_v61  ;;  %1797 = vmatprep.mubr.f32.mxu1 %v3928_v50  ;;  %v3431_v61 = vld [vmem:[%s5635_s5 + $0x260] sm:$0xff] }
 0x21f   : > { %1752 = vmatpush1.msra.mxu1 %v1597_v62  ;;  %1708 = vmatprep.mubr.f32.mxu0 %v3928_v50  ;;  %v3409_v62 = vld [vmem:[%s5635_s5 + $0x1d0] sm:$0xff] }
 0x220   : > { %1753 = vmatprep.subr.mxu1 %v1596_v63  ;;  %1662 = vmatprep.subr.mxu0 %v3378_v1  ;;  %v3430_v63 = vld [vmem:[%s5635_s5 + $0x258] sm:$0xff]  ;;  %v3429_v1 = vld [vmem:[%s5635_s5 + $0x250] sm:$0xff] }
 0x221   : > { %1754 = vmatpush1.msra.mxu1 %v1595_v0  ;;  %1663 = vmatpush1.msra.mxu0 %v3377_v4  ;;  %v3408_v0 = vld [vmem:[%s5635_s5 + $0x1c8] sm:$0xff] }
 0x222   : > { %1755 = vmatprep.subr.mxu1 %v1594_v2  ;;  %1664 = vmatprep.subr.mxu0 %v3376_v6  ;;  %v3407_v2 = vld [vmem:[%s5635_s5 + $0x1c0] sm:$0xff]  ;;  %v3428_v4 = vld [vmem:[%s5635_s5 + $0x248] sm:$0xff] }
 0x223   : > { %1756 = vmatpush1.msra.mxu1 %v1593_v5  ;;  %1665 = vmatpush1.msra.mxu0 %v3375_v8  ;;  %v3406_v5 = vld [vmem:[%s5635_s5 + $0x1b8] sm:$0xff]  ;;  %v3427_v6 = vld [vmem:[%s5635_s5 + $0x240] sm:$0xff] }
 0x224   : > { %1757 = vmatprep.subr.mxu1 %v1592_v7  ;;  %1666 = vmatprep.subr.mxu0 %v3374_v10  ;;  %v3405_v7 = vld [vmem:[%s5635_s5 + $0x1b0] sm:$0xff]  ;;  %v3426_v8 = vld [vmem:[%s5635_s5 + $0x238] sm:$0xff] }
 0x225   : > { %1758 = vmatpush1.msra.mxu1 %v1591_v9  ;;  %1667 = vmatpush1.msra.mxu0 %v3373_v12  ;;  %v3404_v9 = vld [vmem:[%s5635_s5 + $0x1a8] sm:$0xff]  ;;  %v3425_v10 = vld [vmem:[%s5635_s5 + $0x230] sm:$0xff] }
 0x226   : > { %1759 = vmatprep.subr.mxu1 %v1590_v11  ;;  %1668 = vmatprep.subr.mxu0 %v3372_v14  ;;  %v3403_v11 = vld [vmem:[%s5635_s5 + $0x1a0] sm:$0xff]  ;;  %v3424_v12 = vld [vmem:[%s5635_s5 + $0x228] sm:$0xff] }
 0x227   : > { %1760 = vmatpush1.msra.mxu1 %v1589_v13  ;;  %1669 = vmatpush1.msra.mxu0 %v3371_v16  ;;  %v3402_v13 = vld [vmem:[%s5635_s5 + $0x198] sm:$0xff]  ;;  %v3423_v14 = vld [vmem:[%s5635_s5 + $0x220] sm:$0xff] }
 0x228   : > { %1761 = vmatprep.subr.mxu1 %v1588_v15  ;;  %1670 = vmatprep.subr.mxu0 %v3370_v19  ;;  %v3401_v15 = vld [vmem:[%s5635_s5 + $0x190] sm:$0xff]  ;;  %v3422_v16 = vld [vmem:[%s5635_s5 + $0x218] sm:$0xff] }
 0x229   : > { %1762 = vmatpush1.msra.mxu1 %v1587_v17  ;;  %1671 = vmatpush1.msra.mxu0 %v3369_v21  ;;  %v3400_v17 = vld [vmem:[%s5635_s5 + $0x188] sm:$0xff]  ;;  %v3421_v19 = vld [vmem:[%s5635_s5 + $0x210] sm:$0xff]  ;;  %v3398_v21 = vld [vmem:[%s5635_s5 + $0x178] sm:$0xff] }
 0x22a   : > { %1763 = vmatprep.subr.mxu1 %v1586_v20  ;;  %1672 = vmatprep.subr.mxu0 %v3368_v23  ;;  %v3399_v20 = vld [vmem:[%s5635_s5 + $0x180] sm:$0xff] }
 0x22b   : > { %1764 = vmatpush1.msra.mxu1 %v1585_v22  ;;  %1673 = vmatpush1.msra.mxu0 %v3367_v26  ;;  %v3397_v22 = vld [vmem:[%s5635_s5 + $0x170] sm:$0xff]  ;;  %v3395_v26 = vld [vmem:[%s5635_s5 + $0x160] sm:$0xff] }
 0x22c   : > { %3443 = vmatprep.subr.msk.mxu1 %vm1203_vm1, %v3442_v25  ;;  %1674 = vmatprep.subr.mxu0 %v3366_v27  ;;  %v3396_v25 = vld [vmem:[%s5635_s5 + $0x168] sm:$0xff] }
 0x22d   : > { %1675 = vmatpush1.msra.mxu0 %v3365_v30  ;;  %v3468_v27 = vld [vmem:[%s5635_s5 + $0x368] sm:$0xf] }
 0x22e   : > { %3417 = vmatprep.subr.msk.mxu0 %vm1203_vm1, %v3416_v31 }
 0x2d4   : > { %v1471_v28 = vpop.f32.mrf.mxu0  ;;  %v1568_v29 = vpop.f32.mrf.mxu1 }
 0x2d5   : > { %v1577_v32 = vmax.f32 %v1471_v28, %v1568_v29  ;;  %v3467_v28 = vld [vmem:[%s5635_s5 + $0x360] sm:$0xf]  ;;  %v3466_v29 = vld [vmem:[%s5635_s5 + $0x358] sm:$0xff] }
 0x2d6   : > { %v1473_v33 = vpop.f32.mrf.mxu0  ;;  %v1570_v34 = vpop.f32.mrf.mxu1 }
 0x2d7   : > { %1580 = vst.msk [vmem:[#allocation2] sm:$0xff] %vm1579_vm4, %v1577_v32  ;;  %v3465_v32 = vld [vmem:[%s5635_s5 + $0x350] sm:$0xff]  ;;  %v3464_v33 = vld [vmem:[%s5635_s5 + $0x348] sm:$0xff]  ;;  %v3463_v34 = vld [vmem:[%s5635_s5 + $0x340] sm:$0xff] }
 0x2d8   : > { %v1476_v35 = vpop.f32.mrf.mxu0  ;;  %v1573_v36 = vpop.f32.mrf.mxu1 }
 0x2d9   : > { %v1578_v37 = vmax.f32 %v1476_v35, %v1573_v36  ;;  %v3462_v36 = vld [vmem:[%s5635_s5 + $0x338] sm:$0xff] }
 0x2da   : > { %v1478_v38 = vpop.f32.mrf.mxu0  ;;  %v1575_v39 = vpop.f32.mrf.mxu1 }
 0x2db   : > { %1582 = vst.msk [vmem:[#allocation2 + $0x8] sm:$0x3f] %vm1581_vm5, %v1578_v37  ;;  %v3461_v37 = vld [vmem:[%s5635_s5 + $0x330] sm:$0xff]  ;;  %v3460_v38 = vld [vmem:[%s5635_s5 + $0x328] sm:$0xff]  ;;  %v3459_v39 = vld [vmem:[%s5635_s5 + $0x320] sm:$0xff] }
 0x2de   : > { %v1583_v41 = vld [vmem:[#allocation2] sm:$0xff] }
 0x2df   : > { %3393 = vmatmul.mubr.msk.f32.vlgmr.msra.gmra.mxu1 %vm1579_vm4, %v1583_v41  ;;  %v3457_v41 = vld [vmem:[%s5635_s5 + $0x310] sm:$0xff] }
 0x2e0   : > { %3444 = vmatpush1.msk.msra.mxu1 %vm1203_vm1, %v3441_v40  ;;  %1803 = vmatprep.mubr.f32.mxu1 %v3928_v50  ;;  %v3458_v40 = vld [vmem:[%s5635_s5 + $0x318] sm:$0xff] }
 0x2e1   : > { %1977 = vmatprep.subr.mxu1 %v3440_v42  ;;  %v3456_v42 = vld [vmem:[%s5635_s5 + $0x308] sm:$0xff] }
 0x2e2   : > { %1978 = vmatpush1.msra.mxu1 %v3439_v43  ;;  %v1607_v48 = vld [vmem:[#allocation2 + $0x1] sm:$0xff]  ;;  %v1608_v60 = vld [vmem:[#allocation2 + $0x9] sm:$0x3]  ;;  %v1929_v31 = vld [vmem:[#allocation2 + $0xb] sm:$0x3] }
 0x2e3   : > { %v1584_v51 = vld [vmem:[#allocation2 + $0x8] sm:$0x3]  ;;  %1979 = vmatprep.subr.mxu1 %v3438_v44  ;;  %3389 = vmatmul.mubr.msk.f32.vlgmr.msra.gmra.mxu0 %vm1579_vm4, %v1607_v48  ;;  %v1811_v35 = vld [vmem:[#allocation2 + $0xa] sm:$0x3]  ;;  %v3455_v43 = vld [vmem:[%s5635_s5 + $0x300] sm:$0xff] }
 0x2e4   : > { %3394 = vmatmul.mubr.msk.f32.gmra.mxu1 %vm1579_vm4, %v1584_v51  ;;  %3418 = vmatpush1.msk.msra.mxu0 %vm1203_vm1, %v3415_v45  ;;  %v1928_v23 = vld [vmem:[#allocation2 + $0x3] sm:$0xff]  ;;  %v3454_v44 = vld [vmem:[%s5635_s5 + $0x2f8] sm:$0xff]  ;;  %v3453_v45 = vld [vmem:[%s5635_s5 + $0x2f0] sm:$0xff] }
 0x2e5   : > { %1980 = vmatpush1.msra.mxu1 %v3437_v46  ;;  %1859 = vmatprep.subr.mxu0 %v3414_v52  ;;  %v1810_v30 = vld [vmem:[#allocation2 + $0x2] sm:$0xff]  ;;  %v3450_v51 = vld [vmem:[%s5635_s5 + $0x2d8] sm:$0xff]  ;;  %v3449_v52 = vld [vmem:[%s5635_s5 + $0x2d0] sm:$0xff] }
 0x2e6   : > { %1981 = vmatprep.subr.mxu1 %v3436_v53  ;;  %1860 = vmatpush1.msra.mxu0 %v3413_v54  ;;  %v3452_v46 = vld [vmem:[%s5635_s5 + $0x2e8] sm:$0xff]  ;;  %v3451_v48 = vld [vmem:[%s5635_s5 + $0x2e0] sm:$0xff] }
 0x2e7   : > { %1982 = vmatpush1.msra.mxu1 %v3435_v55  ;;  %1714 = vmatprep.mubr.f32.mxu0 %v3928_v50  ;;  %v3448_v53 = vld [vmem:[%s5635_s5 + $0x2c8] sm:$0xff]  ;;  %v3447_v54 = vld [vmem:[%s5635_s5 + $0x2c0] sm:$0xff] }
 0x2e8   : > { %1861 = vmatprep.subr.mxu0 %v3412_v49  ;;  %1983 = vmatprep.subr.mxu1 %v3434_v56  ;;  %v2046_v55 = vld [vmem:[#allocation2 + $0x4] sm:$0xff]  ;;  %v2047_v49 = vld [vmem:[#allocation2 + $0xc] sm:$0x3] }
 0x2e9   : > { %3390 = vmatmul.mubr.msk.f32.gmra.mxu0 %vm1579_vm4, %v1608_v60  ;;  %1984 = vmatpush1.msra.mxu1 %v3433_v57 }
 0x2ea   : > { %1862 = vmatpush1.msra.mxu0 %v3411_v47  ;;  %1985 = vmatprep.subr.mxu1 %v3432_v59 }
 0x2eb   : > { %1863 = vmatprep.subr.mxu0 %v3410_v58  ;;  %1986 = vmatpush1.msra.mxu1 %v3431_v61 }
 0x2ec   : > { %1864 = vmatpush1.msra.mxu0 %v3409_v62  ;;  %1987 = vmatprep.subr.mxu1 %v3430_v63 }
 0x2ed   : > { %1865 = vmatprep.subr.mxu0 %v3408_v0  ;;  %1988 = vmatpush1.msra.mxu1 %v3429_v1 }
 0x2ee   : > { %1866 = vmatpush1.msra.mxu0 %v3407_v2  ;;  %1989 = vmatprep.subr.mxu1 %v3428_v4 }
 0x2ef   : > { %1867 = vmatprep.subr.mxu0 %v3406_v5  ;;  %1990 = vmatpush1.msra.mxu1 %v3427_v6 }
 0x2f0   : > { %1868 = vmatpush1.msra.mxu0 %v3405_v7  ;;  %1991 = vmatprep.subr.mxu1 %v3426_v8 }
 0x2f1   : > { %1869 = vmatprep.subr.mxu0 %v3404_v9  ;;  %1992 = vmatpush1.msra.mxu1 %v3425_v10 }
 0x2f2   : > { %1870 = vmatpush1.msra.mxu0 %v3403_v11  ;;  %1993 = vmatprep.subr.mxu1 %v3424_v12 }
 0x2f3   : > { %1871 = vmatprep.subr.mxu0 %v3402_v13  ;;  %1994 = vmatpush1.msra.mxu1 %v3423_v14 }
 0x2f4   : > { %1872 = vmatpush1.msra.mxu0 %v3401_v15  ;;  %1995 = vmatprep.subr.mxu1 %v3422_v16 }
 0x2f5   : > { %1873 = vmatprep.subr.mxu0 %v3400_v17  ;;  %1996 = vmatpush1.msra.mxu1 %v3421_v19  ;;  %v2164_v17 = vld [vmem:[%s5636_s6] sm:$0x3] }
 0x2f6   : > { %1874 = vmatpush1.msra.mxu0 %v3399_v20  ;;  %2029 = vmatprep.mubr.f32.mxu1 %v3928_v50 }
 0x2f7   : > { %1875 = vmatprep.subr.mxu0 %v3398_v21  ;;  %3445 = vmatmul.mubr.msk.f32.vlgmr.msra.gmra.mxu1 %vm1579_vm4, %v1928_v23 }
 0x2f8   : > { %1876 = vmatpush1.msra.mxu0 %v3397_v22  ;;  %1911 = vmatprep.mubr.f32.mxu0 %v3928_v50 }
 0x2f9   : > { %1877 = vmatprep.subr.mxu0 %v3396_v25  ;;  %2035 = vmatprep.mubr.f32.mxu1 %v3928_v50 }
 0x2fa   : > { %1878 = vmatpush1.msra.mxu0 %v3395_v26  ;;  %v2173_v26 = vrot.slane %v2164_v17, %v1174_v24  ;;  %v2360_v24 = vld [vmem:[%s5638_s8 + $0x78] sm:$0xff] }
 0x2fb   : > { %3419 = vmatmul.mubr.msk.f32.vlgmr.msra.gmra.mxu0 %vm1579_vm4, %v1810_v30  ;;  %3446 = vmatmul.mubr.msk.f32.gmra.mxu1 %vm1579_vm4, %v1929_v31 }
 0x2fc   : > { %3469 = vmatprep.subr.msk.mxu0 %vm1203_vm1, %v3468_v27  ;;  %1917 = vmatprep.mubr.f32.mxu0 %v3928_v50 }
 0x2fd   : > { %3470 = vmatpush1.msk.msra.mxu0 %vm1203_vm1, %v3467_v28  ;;  %2336 = vmatprep.mubr.f32.mxu1 %v3928_v50  ;;  %v2169_v28 = vrot.slane %v2164_v17, %v1170_v18  ;;  %v3476_v18 = vld [vmem:[%s5637_s7 + $0x8] sm:$0x1f]  ;;  %v3497_v17 = vld [vmem:[%s5638_s8 + $0x120] sm:$0xff] }
 0x2fe   : > { %2095 = vmatprep.subr.mxu0 %v3466_v29 }
 0x2ff   : > { %2096 = vmatpush1.msra.mxu0 %v3465_v32 }
 0x300   : > { %3420 = vmatmul.mubr.msk.f32.gmra.mxu0 %vm1579_vm4, %v1811_v35  ;;  %2097 = vmatprep.subr.mxu0 %v3464_v33 }
 0x301   : > { %2098 = vmatpush1.msra.mxu0 %v3463_v34  ;;  %2147 = vmatprep.mubr.f32.mxu0 %v3928_v50 }
 0x302   : > { %2099 = vmatprep.subr.mxu0 %v3462_v36 }
 0x303   : > { %2100 = vmatpush1.msra.mxu0 %v3461_v37 }
 0x304   : > { %2101 = vmatprep.subr.mxu0 %v3460_v38 }
 0x305   : > { %2102 = vmatpush1.msra.mxu0 %v3459_v39 }
 0x306   : > { %2103 = vmatprep.subr.mxu0 %v3458_v40 }
 0x307   : > { %2104 = vmatpush1.msra.mxu0 %v3457_v41  ;;  %v3496_v41 = vld [vmem:[%s5638_s8 + $0x118] sm:$0xff] }
 0x308   : > { %2105 = vmatprep.subr.mxu0 %v3456_v42  ;;  %v2359_v42 = vld [vmem:[%s5638_s8 + $0x70] sm:$0xff] }
 0x309   : > { %2106 = vmatpush1.msra.mxu0 %v3455_v43  ;;  %v3495_v43 = vld [vmem:[%s5638_s8 + $0x110] sm:$0xff] }
 0x30a   : > { %2107 = vmatprep.subr.mxu0 %v3454_v44  ;;  %v2358_v44 = vld [vmem:[%s5638_s8 + $0x68] sm:$0xff] }
 0x30b   : > { %2108 = vmatpush1.msra.mxu0 %v3453_v45  ;;  %v3494_v45 = vld [vmem:[%s5638_s8 + $0x108] sm:$0xff] }
 0x30c   : > { %2109 = vmatprep.subr.mxu0 %v3452_v46  ;;  %v2357_v46 = vld [vmem:[%s5638_s8 + $0x60] sm:$0xff] }
 0x30d   : > { %2110 = vmatpush1.msra.mxu0 %v3451_v48  ;;  %v3493_v48 = vld [vmem:[%s5638_s8 + $0x100] sm:$0xff] }
 0x30e   : > { %2111 = vmatprep.subr.mxu0 %v3450_v51  ;;  %v2356_v51 = vld [vmem:[%s5638_s8 + $0x58] sm:$0xff] }
 0x30f   : > { %2112 = vmatpush1.msra.mxu0 %v3449_v52  ;;  %v3492_v52 = vld [vmem:[%s5638_s8 + $0xf8] sm:$0xff] }
 0x310   : > { %2113 = vmatprep.subr.mxu0 %v3448_v53  ;;  %v2355_v53 = vld [vmem:[%s5638_s8 + $0x50] sm:$0xff] }
 0x311   : > { %2114 = vmatpush1.msra.mxu0 %v3447_v54  ;;  %v3491_v54 = vld [vmem:[%s5638_s8 + $0xf0] sm:$0xff] }
 0x312   : > { %3471 = vmatmul.mubr.msk.f32.vlgmr.msra.gmra.mxu0 %vm1579_vm4, %v2046_v55  ;;  %v2354_v55 = vld [vmem:[%s5638_s8 + $0x48] sm:$0xff] }
 0x313   : > { %2153 = vmatprep.mubr.f32.mxu0 %v3928_v50 }
 0x316   : > { %3472 = vmatmul.mubr.msk.f32.gmra.mxu0 %vm1579_vm4, %v2047_v49  ;;  %v3490_v49 = vld [vmem:[%s5638_s8 + $0xe8] sm:$0xff] }
 0x317   : > { %2260 = vmatprep.mubr.f32.mxu0 %v3928_v50 }
 0x39f   : > { %v1799_v47 = vpop.f32.mrf.mxu1 }
 0x3a1   : > { %v1801_v60 = vpop.f32.mrf.mxu1 }
 0x3a3   : > { %v1710_v56 = vpop.f32.mrf.mxu0 }
 0x3a4   : > { %v1805_v61 = vpop.f32.mrf.mxu1  ;;  %v1800_v7 = vadd.f32 %v1799_v47, %v1710_v56  ;;  %v2353_v56 = vld [vmem:[%s5638_s8 + $0x40] sm:$0xff]  ;;  %v2352_v47 = vld [vmem:[%s5638_s8 + $0x38] sm:$0xff] }
 0x3a5   : > { %v1712_v57 = vpop.f32.mrf.mxu0 }
 0x3a6   : > { %v1807_v63 = vpop.f32.mrf.mxu1  ;;  %v1802_v5 = vadd.f32 %v1801_v60, %v1712_v57  ;;  %v3489_v57 = vld [vmem:[%s5638_s8 + $0xe0] sm:$0xff]  ;;  %v2351_v60 = vld [vmem:[%s5638_s8 + $0x30] sm:$0xff] }
 0x3a9   : > { %v1716_v59 = vpop.f32.mrf.mxu0 }
 0x3aa   : > { %v1806_v6 = vadd.f32 %v1805_v61, %v1716_v59  ;;  %v3488_v59 = vld [vmem:[%s5638_s8 + $0xd8] sm:$0xff]  ;;  %v2350_v61 = vld [vmem:[%s5638_s8 + $0x28] sm:$0xff] }
 0x3ab   : > { %v1718_v58 = vpop.f32.mrf.mxu0 }
 0x3ac   : > { %v1808_v9 = vadd.f32 %v1807_v63, %v1718_v58  ;;  %v3487_v58 = vld [vmem:[%s5638_s8 + $0xd0] sm:$0xff]  ;;  %v2349_v63 = vld [vmem:[%s5638_s8 + $0x20] sm:$0xff] }
 0x3b7   : > { %v2031_v1 = vpop.f32.mrf.mxu1 }
 0x3b9   : > { %v2033_v4 = vpop.f32.mrf.mxu1 }
 0x3bb   : > { %v1913_v62 = vpop.f32.mrf.mxu0  ;;  %v2037_v13 = vpop.f32.mrf.mxu1 }
 0x3bc   : > { %v1924_v12 = vadd.f32 %v1913_v62, %v1800_v7  ;;  %v3486_v62 = vld [vmem:[%s5638_s8 + $0xc8] sm:$0xff] }
 0x3bd   : > { %v1915_v0 = vpop.f32.mrf.mxu0  ;;  %v2039_v21 = vpop.f32.mrf.mxu1  ;;  %v3482_v7 = vld [vmem:[%s5638_s8 + $0xa8] sm:$0xff] }
 0x3be   : > { %v1925_v10 = vadd.f32 %v1915_v0, %v1802_v5  ;;  %v2042_v22 = vadd.f32 %v2031_v1, %v1924_v12  ;;  %v3485_v0 = vld [vmem:[%s5638_s8 + $0xc0] sm:$0xff]  ;;  %v2348_v1 = vld [vmem:[%s5638_s8 + $0x18] sm:$0xff]  ;;  %v3483_v5 = vld [vmem:[%s5638_s8 + $0xb0] sm:$0xff] }
 0x3bf   : > { %v2363_v12 = vld [vmem:[%s5638_s8 + $0x90] sm:$0xff] }
 0x3c0   : > { %v1919_v2 = vpop.f32.mrf.mxu0  ;;  %v2043_v19 = vadd.f32 %v2033_v4, %v1925_v10  ;;  %v2347_v4 = vld [vmem:[%s5638_s8 + $0x10] sm:$0xff]  ;;  %v2364_v10 = vld [vmem:[%s5638_s8 + $0x98] sm:$0xff] }
 0x3c1   : > { %v1926_v11 = vadd.f32 %v1919_v2, %v1806_v6  ;;  %v3484_v2 = vld [vmem:[%s5638_s8 + $0xb8] sm:$0xff]  ;;  %v2346_v6 = vld [vmem:[%s5638_s8 + $0x8] sm:$0xff] }
 0x3c2   : > { %v1921_v8 = vpop.f32.mrf.mxu0 }
 0x3c3   : > { %v1927_v15 = vadd.f32 %v1921_v8, %v1808_v9  ;;  %v2044_v20 = vadd.f32 %v2037_v13, %v1926_v11  ;;  %v2345_v8 = vld [vmem:[%s5638_s8] sm:$0xff]  ;;  %v3500_v11 = vld [vmem:[%s5638_s8 + $0x138] sm:$0xff]  ;;  %v3499_v13 = vld [vmem:[%s5638_s8 + $0x130] sm:$0xff] }
 0x3c4   : > { %v3481_v9 = vld [vmem:[%s5638_s8 + $0xa0] sm:$0xff] }
 0x3c5   : > { %v2045_v30 = vadd.f32 %v2039_v21, %v1927_v15  ;;  %v3498_v15 = vld [vmem:[%s5638_s8 + $0x128] sm:$0xff] }
 0x3d2   : > { %v2149_v14 = vpop.f32.mrf.mxu0 }
 0x3d3   : > { %v2160_v31 = vadd.f32 %v2149_v14, %v2042_v22  ;;  %v2362_v14 = vld [vmem:[%s5638_s8 + $0x88] sm:$0xff] }
 0x3d4   : > { %v2151_v16 = vpop.f32.mrf.mxu0 }
 0x3d5   : > { %v2161_v25 = vadd.f32 %v2151_v16, %v2043_v19  ;;  %v2176_v36 = vadd.f32 %v2169_v28, %v2160_v31  ;;  %v2361_v16 = vld [vmem:[%s5638_s8 + $0x80] sm:$0xff] }
 0x3d6   : > { %v2155_v23 = vpop.f32.mrf.mxu0  ;;  %v2542_v31 = vld [vmem:[%s5639_s9 + $0x40] sm:$0xff] }
 0x3d7   : > { %v2162_v27 = vadd.f32 %v2155_v23, %v2044_v20  ;;  %v2177_v34 = vadd.f32 %v2173_v26, %v2161_v25  ;;  %v2180_v40 = vmax.f32 %v2176_v36, 0.0  ;;  %v3506_v36 = vld [vmem:[%s5639_s9 + $0x70] sm:$0xff] }
 0x3d8   : > { %v2157_v29 = vpop.f32.mrf.mxu0 }
 0x3d9   : > { %v2163_v32 = vadd.f32 %v2157_v29, %v2045_v30  ;;  %v2178_v33 = vadd.f32 %v2169_v28, %v2162_v27  ;;  %v2181_v39 = vmax.f32 %v2177_v34, 0.0  ;;  %v2543_v27 = vld [vmem:[%s5639_s9 + $0x48] sm:$0xff]  ;;  %v3510_v30 = vld [vmem:[%s5639_s9 + $0x90] sm:$0xff]  ;;  %v2541_v29 = vld [vmem:[%s5639_s9 + $0x38] sm:$0xff] }
 0x3da   : > { %v3509_v28 = vld [vmem:[%s5639_s9 + $0x88] sm:$0xff]  ;;  %v3507_v34 = vld [vmem:[%s5639_s9 + $0x78] sm:$0xff] }
 0x3db   : > { %v2179_v35 = vadd.f32 %v2173_v26, %v2163_v32  ;;  %v2182_v38 = vmax.f32 %v2178_v33, 0.0  ;;  %v3511_v26 = vld [vmem:[%s5639_s9 + $0x98] sm:$0xff]  ;;  %v3508_v32 = vld [vmem:[%s5639_s9 + $0x80] sm:$0xff]  ;;  %v2540_v33 = vld [vmem:[%s5639_s9 + $0x30] sm:$0xff] }
 0x3dd   : > { %v2183_v37 = vmax.f32 %v2179_v35, 0.0  ;;  %v2539_v35 = vld [vmem:[%s5639_s9 + $0x28] sm:$0xff] }
 0x3df   : > { %3473 = vmatprep.subr.msk.mxu0 %vm2189_vm6, %v2183_v37  ;;  %3477 = vmatprep.subr.msk.mxu1 %vm2189_vm6, %v2183_v37  ;;  %v2538_v37 = vld [vmem:[%s5639_s9 + $0x20] sm:$0xff] }
 0x3e0   : > { %3474 = vmatpush1.msk.msra.mxu0 %vm2189_vm6, %v2182_v38  ;;  %3478 = vmatpush1.msk.msra.mxu1 %vm2189_vm6, %v2182_v38  ;;  %v3505_v38 = vld [vmem:[%s5639_s9 + $0x68] sm:$0xff] }
 0x3e1   : > { %2226 = vmatprep.subr.mxu0 %v2181_v39  ;;  %2302 = vmatprep.subr.mxu1 %v2181_v39  ;;  %v2537_v39 = vld [vmem:[%s5639_s9 + $0x18] sm:$0xff] }
 0x3e2   : > { %2227 = vmatpush1.msra.mxu0 %v2180_v40  ;;  %2303 = vmatpush1.msra.mxu1 %v2180_v40  ;;  %v3504_v40 = vld [vmem:[%s5639_s9 + $0x60] sm:$0xff] }
 0x3e3   : > { %3475 = vmatmul.mubr.msk.f32.vlgmr.msra.gmra.mxu0 %vm2185_vm7, %v2184_v3  ;;  %3479 = vmatmul.mubr.msk.f32.vlgmr.msra.gmra.mxu1 %vm2185_vm7, %v3476_v18  ;;  %v2536_v3 = vld [vmem:[%s5639_s9 + $0x10] sm:$0xff]  ;;  %v3503_v18 = vld [vmem:[%s5639_s9 + $0x58] sm:$0xff] }
 0x3e4   : > { %2369 = vmatprep.subr.mxu1 %v3928_v50  ;;  %2460 = vmatprep.subr.mxu0 %v3928_v50 }
 0x3e5   : > { %2370 = vmatpush1.msra.mxu1 %v2360_v24  ;;  %2461 = vmatpush1.msra.mxu0 %v3496_v41  ;;  %v2535_v24 = vld [vmem:[%s5639_s9 + $0x8] sm:$0xff]  ;;  %v3502_v41 = vld [vmem:[%s5639_s9 + $0x50] sm:$0xff] }
 0x3e6   : > { %2371 = vmatprep.subr.mxu1 %v3928_v50  ;;  %2462 = vmatprep.subr.mxu0 %v3928_v50 }
 0x3e7   : > { %2372 = vmatpush1.msra.mxu1 %v2359_v42  ;;  %2463 = vmatpush1.msra.mxu0 %v3495_v43  ;;  %v2534_v42 = vld [vmem:[%s5639_s9] sm:$0xff] }
 0x3e8   : > { %2373 = vmatprep.subr.mxu1 %v3928_v50  ;;  %2464 = vmatprep.subr.mxu0 %v3928_v50 }
 0x3e9   : > { %2374 = vmatpush1.msra.mxu1 %v2358_v44  ;;  %2465 = vmatpush1.msra.mxu0 %v3494_v45 }
 0x3ea   : > { %2375 = vmatprep.subr.mxu1 %v3928_v50  ;;  %2466 = vmatprep.subr.mxu0 %v3928_v50 }
 0x3eb   : > { %2376 = vmatpush1.msra.mxu1 %v2357_v46  ;;  %2467 = vmatpush1.msra.mxu0 %v3493_v48 }
 0x3ec   : > { %2377 = vmatprep.subr.mxu1 %v3928_v50  ;;  %2468 = vmatprep.subr.mxu0 %v3928_v50 }
 0x3ed   : > { %2378 = vmatpush1.msra.mxu1 %v2356_v51  ;;  %2469 = vmatpush1.msra.mxu0 %v3492_v52  ;;  %v3523_v51 = vld [vmem:[%s5639_s9 + $0xe8] sm:$0xff]  ;;  %v3534_v52 = vld [vmem:[%s5639_s9 + $0x138] sm:$0xff] }
 0x3ee   : > { %2379 = vmatprep.subr.mxu1 %v3928_v50  ;;  %2470 = vmatprep.subr.mxu0 %v3928_v50 }
 0x3ef   : > { %2380 = vmatpush1.msra.mxu1 %v2355_v53  ;;  %2471 = vmatpush1.msra.mxu0 %v3491_v54 }
 0x3f0   : > { %2381 = vmatprep.subr.mxu1 %v3928_v50  ;;  %2472 = vmatprep.subr.mxu0 %v3928_v50 }
 0x3f1   : > { %2382 = vmatpush1.msra.mxu1 %v2354_v55  ;;  %2473 = vmatpush1.msra.mxu0 %v3490_v49  ;;  %v3522_v55 = vld [vmem:[%s5639_s9 + $0xe0] sm:$0xff]  ;;  %v3533_v49 = vld [vmem:[%s5639_s9 + $0x130] sm:$0xff] }
 0x3f2   : > { %2383 = vmatprep.subr.mxu1 %v3928_v50  ;;  %2474 = vmatprep.subr.mxu0 %v3928_v50 }
 0x3f3   : > { %2384 = vmatpush1.msra.mxu1 %v2353_v56  ;;  %2475 = vmatpush1.msra.mxu0 %v3489_v57  ;;  %v3521_v56 = vld [vmem:[%s5639_s9 + $0xd8] sm:$0xff]  ;;  %v3532_v57 = vld [vmem:[%s5639_s9 + $0x128] sm:$0xff] }
 0x3f4   : > { %2385 = vmatprep.subr.mxu1 %v3928_v50  ;;  %2476 = vmatprep.subr.mxu0 %v3928_v50 }
 0x3f5   : > { %2386 = vmatpush1.msra.mxu1 %v2352_v47  ;;  %2477 = vmatpush1.msra.mxu0 %v3488_v59  ;;  %v3520_v47 = vld [vmem:[%s5639_s9 + $0xd0] sm:$0xff]  ;;  %v3531_v59 = vld [vmem:[%s5639_s9 + $0x120] sm:$0xff] }
 0x3f6   : > { %2387 = vmatprep.subr.mxu1 %v3928_v50  ;;  %2478 = vmatprep.subr.mxu0 %v3928_v50 }
 0x3f7   : > { %2388 = vmatpush1.msra.mxu1 %v2351_v60  ;;  %2479 = vmatpush1.msra.mxu0 %v3487_v58  ;;  %v3519_v60 = vld [vmem:[%s5639_s9 + $0xc8] sm:$0xff]  ;;  %v3530_v58 = vld [vmem:[%s5639_s9 + $0x118] sm:$0xff] }
 0x3f8   : > { %2389 = vmatprep.subr.mxu1 %v3928_v50  ;;  %2480 = vmatprep.subr.mxu0 %v3928_v50 }
 0x3f9   : > { %2390 = vmatpush1.msra.mxu1 %v2350_v61  ;;  %2481 = vmatpush1.msra.mxu0 %v3486_v62  ;;  %v3518_v61 = vld [vmem:[%s5639_s9 + $0xc0] sm:$0xff]  ;;  %v3529_v62 = vld [vmem:[%s5639_s9 + $0x110] sm:$0xff] }
 0x3fa   : > { %2391 = vmatprep.subr.mxu1 %v3928_v50  ;;  %2482 = vmatprep.subr.mxu0 %v3928_v50 }
 0x3fb   : > { %2392 = vmatpush1.msra.mxu1 %v2349_v63  ;;  %2483 = vmatpush1.msra.mxu0 %v3485_v0  ;;  %v3517_v63 = vld [vmem:[%s5639_s9 + $0xb8] sm:$0xff]  ;;  %v3528_v0 = vld [vmem:[%s5639_s9 + $0x108] sm:$0xff] }
 0x3fc   : > { %2393 = vmatprep.subr.mxu1 %v3928_v50  ;;  %2484 = vmatprep.subr.mxu0 %v3928_v50 }
 0x3fd   : > { %2394 = vmatpush1.msra.mxu1 %v2348_v1  ;;  %2485 = vmatpush1.msra.mxu0 %v3484_v2  ;;  %v3516_v1 = vld [vmem:[%s5639_s9 + $0xb0] sm:$0xff]  ;;  %v3527_v2 = vld [vmem:[%s5639_s9 + $0x100] sm:$0xff] }
 0x3fe   : > { %2395 = vmatprep.subr.mxu1 %v3928_v50  ;;  %2486 = vmatprep.subr.mxu0 %v3928_v50 }
 0x3ff   : > { %2396 = vmatpush1.msra.mxu1 %v2347_v4  ;;  %2487 = vmatpush1.msra.mxu0 %v3483_v5  ;;  %v3515_v4 = vld [vmem:[%s5639_s9 + $0xa8] sm:$0xff]  ;;  %v3526_v5 = vld [vmem:[%s5639_s9 + $0xf8] sm:$0xff] }
 0x400   : > { %2397 = vmatprep.subr.mxu1 %v3928_v50  ;;  %2488 = vmatprep.subr.mxu0 %v3928_v50 }
 0x401   : > { %2398 = vmatpush1.msra.mxu1 %v2346_v6  ;;  %2489 = vmatpush1.msra.mxu0 %v3482_v7  ;;  %v3514_v6 = vld [vmem:[%s5639_s9 + $0xa0] sm:$0xff]  ;;  %v3525_v7 = vld [vmem:[%s5639_s9 + $0xf0] sm:$0xff] }
 0x402   : > { %2399 = vmatprep.subr.mxu1 %v3928_v50  ;;  %2490 = vmatprep.subr.mxu0 %v3928_v50 }
 0x403   : > { %2400 = vmatpush1.msra.mxu1 %v2345_v8  ;;  %2491 = vmatpush1.msra.mxu0 %v3481_v9 }
 0x404   : > { %2425 = vmatprep.subr.mxu1 %v3928_v50  ;;  %2516 = vmatprep.subr.mxu0 %v3928_v50 }
 0x405   : > { %2426 = vmatpush2.msra.mxu1 %v2364_v10  ;;  %2517 = vmatpush2.msra.mxu0 %v3500_v11  ;;  %v3545_v10 = vld [vmem:[%s5639_s9 + $0x188] sm:$0xff]  ;;  %v3544_v11 = vld [vmem:[%s5639_s9 + $0x180] sm:$0xff] }
 0x406   : > { %2427 = vmatprep.subr.mxu1 %v3928_v50  ;;  %2518 = vmatprep.subr.mxu0 %v3928_v50 }
 0x407   : > { %2428 = vmatpush2.msra.mxu1 %v2363_v12  ;;  %2519 = vmatpush2.msra.mxu0 %v3499_v13  ;;  %v3543_v12 = vld [vmem:[%s5639_s9 + $0x178] sm:$0xff]  ;;  %v3542_v13 = vld [vmem:[%s5639_s9 + $0x170] sm:$0xff] }
 0x408   : > { %2429 = vmatprep.subr.mxu1 %v3928_v50  ;;  %2520 = vmatprep.subr.mxu0 %v3928_v50 }
 0x409   : > { %2430 = vmatpush2.msra.mxu1 %v2362_v14  ;;  %2521 = vmatpush2.msra.mxu0 %v3498_v15  ;;  %v3541_v14 = vld [vmem:[%s5639_s9 + $0x168] sm:$0xff]  ;;  %v3540_v15 = vld [vmem:[%s5639_s9 + $0x160] sm:$0xff] }
 0x40a   : > { %2431 = vmatprep.subr.mxu1 %v3928_v50  ;;  %2522 = vmatprep.subr.mxu0 %v3928_v50 }
 0x40b   : > { %2432 = vmatpush2.msra.mxu1 %v2361_v16  ;;  %2523 = vmatpush2.msra.mxu0 %v3497_v17  ;;  %v3539_v16 = vld [vmem:[%s5639_s9 + $0x158] sm:$0xff]  ;;  %v3538_v17 = vld [vmem:[%s5639_s9 + $0x150] sm:$0xff] }
 0x40c   : > { %3640 = vmatprep.subr.mxu1 %v3928_v50  ;;  %3663 = vmatprep.subr.mxu0 %v3928_v50 }
 0x4a3   : > { %v2262_v19 = vpop.f32.mrf.mxu0  ;;  %v2338_v20 = vpop.f32.mrf.mxu1 }
 0x4a4   : > { %v2343_v25 = vmax.f32 %v2262_v19, %v2338_v20  ;;  %v3537_v19 = vld [vmem:[%s5639_s9 + $0x148] sm:$0xff]  ;;  %v3536_v20 = vld [vmem:[%s5639_s9 + $0x140] sm:$0xff] }
 0x4a5   : > { %v2264_v21 = vpop.f32.mrf.mxu0  ;;  %v2340_v22 = vpop.f32.mrf.mxu1 }
 0x4a6   : > { %v2344_v23 = vmax.f32 %v2264_v21, %v2340_v22  ;;  %v2979_v22 = vld [vmem:[%s5641_s11 + $0x78] sm:$0xff] }
 0x4a8   : > { %3480 = vmatprep.mubr.msk.f32.mxu1 %vm2365_vm8, %v2344_v23  ;;  %3501 = vmatprep.mubr.msk.f32.mxu0 %vm2365_vm8, %v2344_v23  ;;  %v2978_v23 = vld [vmem:[%s5641_s11 + $0x70] sm:$0xff] }
 0x4a9   : > { %2434 = vmatmul.mubr.f32.vlgmr.msra.gmra.mxu1 %v2343_v25  ;;  %2525 = vmatmul.mubr.f32.vlgmr.msra.gmra.mxu0 %v2343_v25  ;;  %v2977_v25 = vld [vmem:[%s5641_s11 + $0x68] sm:$0xff] }
 0x4aa   : > { %3641 = vmatpush3.msra.mxu1 %v3511_v26  ;;  %3664 = vmatpush3.msra.mxu0 %v2543_v27  ;;  %v2976_v26 = vld [vmem:[%s5641_s11 + $0x60] sm:$0xff]  ;;  %v2975_v27 = vld [vmem:[%s5641_s11 + $0x58] sm:$0xff] }
 0x4ab   : > { %3642 = vmatprep.subr.mxu1 %v3928_v50  ;;  %3665 = vmatprep.subr.mxu0 %v3928_v50 }
 0x4ac   : > { %3643 = vmatpush3.msra.mxu1 %v3510_v30  ;;  %3666 = vmatpush3.msra.mxu0 %v2542_v31  ;;  %v2974_v30 = vld [vmem:[%s5641_s11 + $0x50] sm:$0xff]  ;;  %v2973_v31 = vld [vmem:[%s5641_s11 + $0x48] sm:$0xff] }
 0x4ad   : > { %3644 = vmatprep.subr.mxu1 %v3928_v50  ;;  %3667 = vmatprep.subr.mxu0 %v3928_v50 }
 0x4ae   : > { %3645 = vmatpush3.msra.mxu1 %v3509_v28  ;;  %3668 = vmatpush3.msra.mxu0 %v2541_v29  ;;  %v2972_v28 = vld [vmem:[%s5641_s11 + $0x40] sm:$0xff]  ;;  %v2971_v29 = vld [vmem:[%s5641_s11 + $0x38] sm:$0xff] }
 0x4af   : > { %3646 = vmatprep.subr.mxu1 %v3928_v50  ;;  %3669 = vmatprep.subr.mxu0 %v3928_v50 }
 0x4b0   : > { %3647 = vmatpush3.msra.mxu1 %v3508_v32  ;;  %3670 = vmatpush3.msra.mxu0 %v2540_v33  ;;  %v2970_v32 = vld [vmem:[%s5641_s11 + $0x30] sm:$0xff]  ;;  %v2969_v33 = vld [vmem:[%s5641_s11 + $0x28] sm:$0xff] }
 0x4b1   : > { %3648 = vmatprep.subr.mxu1 %v3928_v50  ;;  %3671 = vmatprep.subr.mxu0 %v3928_v50 }
 0x4b2   : > { %3649 = vmatpush3.msra.mxu1 %v3507_v34  ;;  %3672 = vmatpush3.msra.mxu0 %v2539_v35  ;;  %v2968_v34 = vld [vmem:[%s5641_s11 + $0x20] sm:$0xff]  ;;  %v2967_v35 = vld [vmem:[%s5641_s11 + $0x18] sm:$0xff] }
 0x4b3   : > { %3650 = vmatprep.subr.mxu1 %v3928_v50  ;;  %3673 = vmatprep.subr.mxu0 %v3928_v50 }
 0x4b4   : > { %3651 = vmatpush3.msra.mxu1 %v3506_v36  ;;  %3674 = vmatpush3.msra.mxu0 %v2538_v37  ;;  %v2966_v36 = vld [vmem:[%s5641_s11 + $0x10] sm:$0xff]  ;;  %v2965_v37 = vld [vmem:[%s5641_s11 + $0x8] sm:$0xff] }
 0x4b5   : > { %3652 = vmatprep.subr.mxu1 %v3928_v50  ;;  %3675 = vmatprep.subr.mxu0 %v3928_v50 }
 0x4b6   : > { %3653 = vmatpush3.msra.mxu1 %v3505_v38  ;;  %3676 = vmatpush3.msra.mxu0 %v2537_v39  ;;  %v2964_v38 = vld [vmem:[%s5641_s11] sm:$0xff]  ;;  %v3067_v39 = vld [vmem:[%s5643_s13 + $0x78] sm:$0xff] }
 0x4b7   : > { %3654 = vmatprep.subr.mxu1 %v3928_v50  ;;  %3677 = vmatprep.subr.mxu0 %v3928_v50 }
 0x4b8   : > { %3655 = vmatpush3.msra.mxu1 %v3504_v40  ;;  %3678 = vmatpush3.msra.mxu0 %v2536_v3  ;;  %v3066_v40 = vld [vmem:[%s5643_s13 + $0x70] sm:$0xff]  ;;  %v3065_v3 = vld [vmem:[%s5643_s13 + $0x68] sm:$0xff] }
 0x4b9   : > { %3656 = vmatprep.subr.mxu1 %v3928_v50  ;;  %3679 = vmatprep.subr.mxu0 %v3928_v50 }
 0x4ba   : > { %3657 = vmatpush3.msra.mxu1 %v3503_v18  ;;  %3680 = vmatpush3.msra.mxu0 %v2535_v24  ;;  %v3064_v18 = vld [vmem:[%s5643_s13 + $0x60] sm:$0xff]  ;;  %v3063_v24 = vld [vmem:[%s5643_s13 + $0x58] sm:$0xff] }
 0x4bb   : > { %3658 = vmatprep.subr.mxu1 %v3928_v50  ;;  %3681 = vmatprep.subr.mxu0 %v3928_v50 }
 0x4bc   : > { %3659 = vmatpush3.msra.mxu1 %v3502_v41  ;;  %3682 = vmatpush3.msra.mxu0 %v2534_v42  ;;  %v3062_v41 = vld [vmem:[%s5643_s13 + $0x50] sm:$0xff]  ;;  %v3061_v42 = vld [vmem:[%s5643_s13 + $0x48] sm:$0xff] }
 0x4bd   : > { %3660 = vmatprep.mubr.msk.f32.mxu1 %vm3929_vm9, %v3928_v50  ;;  %3683 = vmatprep.mubr.msk.f32.mxu0 %vm3929_vm9, %v3928_v50 }
 0x4be   : > { %3686 = vmatprep.subr.mxu1 %v3928_v50  ;;  %3709 = vmatprep.subr.mxu0 %v3928_v50 }
 0x569   : > { %v2435_v43 = vpop.f32.mrf.mxu1  ;;  %v2526_v44 = vpop.f32.mrf.mxu0 }
 0x56a   : > { %v2530_v45 = vmax.f32 %v2435_v43, %v2526_v44  ;;  %v3060_v43 = vld [vmem:[%s5643_s13 + $0x40] sm:$0xff]  ;;  %v3059_v44 = vld [vmem:[%s5643_s13 + $0x38] sm:$0xff] }
 0x56b   : > { %v2437_v46 = vpop.f32.mrf.mxu1  ;;  %v2528_v48 = vpop.f32.mrf.mxu0 }
 0x56c   : > { %2532 = vst.msk [vmem:[#allocation3] sm:$0x1f] %vm2531_vm10, %v2530_v45  ;;  %v3058_v45 = vld [vmem:[%s5643_s13 + $0x30] sm:$0xff]  ;;  %v3057_v46 = vld [vmem:[%s5643_s13 + $0x28] sm:$0xff]  ;;  %v3056_v48 = vld [vmem:[%s5643_s13 + $0x20] sm:$0xff] }
 0x573   : > { %v2544_v53 = vld [vmem:[#allocation3 + $0x1] sm:$0x1]  ;;  %v2533_v54 = vld [vmem:[#allocation3] sm:$0x1]  ;;  %v2703_v8 = vld [vmem:[#allocation3 + $0x2] sm:$0x1] }
 0x574   : > { %3661 = vmatmul.mubr.msk.f32.vlgmr.msra.gmra.mxu1 %vm2556_vm11, %v2544_v53  ;;  %3684 = vmatmul.mubr.msk.f32.vlgmr.msra.gmra.mxu0 %vm2556_vm11, %v2533_v54  ;;  %v2789_v9 = vld [vmem:[#allocation3 + $0x3] sm:$0x1]  ;;  %v2875_v21 = vld [vmem:[#allocation3 + $0x4] sm:$0x1] }
 0x575   : > { %3687 = vmatpush3.msra.mxu1 %v3523_v51  ;;  %3710 = vmatpush3.msra.mxu0 %v3534_v52  ;;  %v3055_v51 = vld [vmem:[%s5643_s13 + $0x18] sm:$0xff] }
 0x576   : > { %3688 = vmatprep.subr.mxu1 %v3928_v50  ;;  %3711 = vmatprep.subr.mxu0 %v3928_v50 }
 0x577   : > { %3689 = vmatpush3.msra.mxu1 %v3522_v55  ;;  %3712 = vmatpush3.msra.mxu0 %v3533_v49 }
 0x578   : > { %3690 = vmatprep.subr.mxu1 %v3928_v50  ;;  %3713 = vmatprep.subr.mxu0 %v3928_v50 }
 0x579   : > { %3691 = vmatpush3.msra.mxu1 %v3521_v56  ;;  %3714 = vmatpush3.msra.mxu0 %v3532_v57 }
 0x57a   : > { %3692 = vmatprep.subr.mxu1 %v3928_v50  ;;  %3715 = vmatprep.subr.mxu0 %v3928_v50 }
 0x57b   : > { %3693 = vmatpush3.msra.mxu1 %v3520_v47  ;;  %3716 = vmatpush3.msra.mxu0 %v3531_v59 }
 0x57c   : > { %3694 = vmatprep.subr.mxu1 %v3928_v50  ;;  %3717 = vmatprep.subr.mxu0 %v3928_v50 }
 0x57d   : > { %3695 = vmatpush3.msra.mxu1 %v3519_v60  ;;  %3718 = vmatpush3.msra.mxu0 %v3530_v58 }
 0x57e   : > { %3696 = vmatprep.subr.mxu1 %v3928_v50  ;;  %3719 = vmatprep.subr.mxu0 %v3928_v50 }
 0x57f   : > { %3697 = vmatpush3.msra.mxu1 %v3518_v61  ;;  %3720 = vmatpush3.msra.mxu0 %v3529_v62  ;;  %v2961_v62 = vld [vmem:[%s5640_s10] sm:$0x1] }
 0x580   : > { %3698 = vmatprep.subr.mxu1 %v3928_v50  ;;  %3721 = vmatprep.subr.mxu0 %v3928_v50 }
 0x581   : > { %3699 = vmatpush3.msra.mxu1 %v3517_v63  ;;  %3722 = vmatpush3.msra.mxu0 %v3528_v0 }
 0x582   : > { %3700 = vmatprep.subr.mxu1 %v3928_v50  ;;  %3723 = vmatprep.subr.mxu0 %v3928_v50 }
 0x583   : > { %3701 = vmatpush3.msra.mxu1 %v3516_v1  ;;  %3724 = vmatpush3.msra.mxu0 %v3527_v2 }
 0x584   : > { %3702 = vmatprep.subr.mxu1 %v3928_v50  ;;  %3725 = vmatprep.subr.mxu0 %v3928_v50 }
 0x585   : > { %3703 = vmatpush3.msra.mxu1 %v3515_v4  ;;  %3726 = vmatpush3.msra.mxu0 %v3526_v5  ;;  %v3054_v4 = vld [vmem:[%s5643_s13 + $0x10] sm:$0xff]  ;;  %v3053_v5 = vld [vmem:[%s5643_s13 + $0x8] sm:$0xff] }
 0x586   : > { %3704 = vmatprep.subr.mxu1 %v3928_v50  ;;  %3727 = vmatprep.subr.mxu0 %v3928_v50 }
 0x587   : > { %3705 = vmatpush3.msra.mxu1 %v3514_v6  ;;  %3706 = vmatprep.mubr.msk.f32.mxu1 %vm3929_vm9, %v3928_v50  ;;  %v3052_v6 = vld [vmem:[%s5643_s13] sm:$0xff] }
 0x588   : > { %3728 = vmatpush3.msra.mxu0 %v3525_v7  ;;  %3729 = vmatprep.mubr.msk.f32.mxu0 %vm3929_vm9, %v3928_v50  ;;  %v2980_v7 = vld [vmem:[%s5642_s12] sm:$0x1] }
 0x589   : > { %3707 = vmatmul.mubr.msk.f32.vlgmr.msra.gmra.mxu1 %vm2556_vm11, %v2703_v8  ;;  %3730 = vmatmul.mubr.msk.f32.vlgmr.msra.gmra.mxu0 %vm2556_vm11, %v2789_v9 }
 0x58a   : > { %3732 = vmatprep.subr.mxu1 %v3928_v50  ;;  %3752 = vmatprep.mubr.msk.f32.mxu1 %vm3929_vm9, %v3928_v50 }
 0x58b   : > { %3733 = vmatpush3.msra.mxu1 %v3545_v10  ;;  %3755 = vmatprep.subr.mxu0 %v3928_v50 }
 0x58c   : > { %3734 = vmatprep.subr.mxu1 %v3928_v50  ;;  %3787 = vmatprep.mubr.msk.f32.mxu0 %vm3929_vm9, %v3928_v50 }
 0x58d   : > { %3735 = vmatpush3.msra.mxu1 %v3544_v11  ;;  %3756 = vmatpush3.msra.mxu0 %v2979_v22 }
 0x58e   : > { %3736 = vmatprep.subr.mxu1 %v3928_v50  ;;  %3757 = vmatprep.subr.mxu0 %v3928_v50 }
 0x58f   : > { %3737 = vmatpush3.msra.mxu1 %v3543_v12  ;;  %3758 = vmatpush3.msra.mxu0 %v2978_v23 }
 0x590   : > { %3738 = vmatprep.subr.mxu1 %v3928_v50  ;;  %3759 = vmatprep.subr.mxu0 %v3928_v50 }
 0x591   : > { %3739 = vmatpush3.msra.mxu1 %v3542_v13  ;;  %3760 = vmatpush3.msra.mxu0 %v2977_v25 }
 0x592   : > { %3740 = vmatprep.subr.mxu1 %v3928_v50  ;;  %3761 = vmatprep.subr.mxu0 %v3928_v50 }
 0x593   : > { %3741 = vmatpush3.msra.mxu1 %v3541_v14  ;;  %3762 = vmatpush3.msra.mxu0 %v2976_v26 }
 0x594   : > { %3742 = vmatprep.subr.mxu1 %v3928_v50  ;;  %3763 = vmatprep.subr.mxu0 %v3928_v50 }
 0x595   : > { %3743 = vmatpush3.msra.mxu1 %v3540_v15  ;;  %3764 = vmatpush3.msra.mxu0 %v2975_v27 }
 0x596   : > { %3744 = vmatprep.subr.mxu1 %v3928_v50  ;;  %3765 = vmatprep.subr.mxu0 %v3928_v50 }
 0x597   : > { %3745 = vmatpush3.msra.mxu1 %v3539_v16  ;;  %3766 = vmatpush3.msra.mxu0 %v2974_v30 }
 0x598   : > { %3746 = vmatprep.subr.mxu1 %v3928_v50  ;;  %3767 = vmatprep.subr.mxu0 %v3928_v50 }
 0x599   : > { %3747 = vmatpush3.msra.mxu1 %v3538_v17  ;;  %3768 = vmatpush3.msra.mxu0 %v2973_v31 }
 0x59a   : > { %3748 = vmatprep.subr.mxu1 %v3928_v50  ;;  %3769 = vmatprep.subr.mxu0 %v3928_v50 }
 0x59b   : > { %3749 = vmatpush3.msra.mxu1 %v3537_v19  ;;  %3770 = vmatpush3.msra.mxu0 %v2972_v28 }
 0x59c   : > { %3750 = vmatprep.subr.mxu1 %v3928_v50  ;;  %3771 = vmatprep.subr.mxu0 %v3928_v50 }
 0x59d   : > { %3751 = vmatpush3.msra.mxu1 %v3536_v20  ;;  %3772 = vmatpush3.msra.mxu0 %v2971_v29 }
 0x59e   : > { %3753 = vmatmul.mubr.msk.f32.vlgmr.msra.gmra.mxu1 %vm2556_vm11, %v2875_v21  ;;  %3790 = vmatprep.subr.mxu1 %v3928_v50 }
 0x59f   : > { %3822 = vmatprep.mubr.msk.f32.mxu1 %vm3929_vm9, %v3928_v50  ;;  %3773 = vmatprep.subr.mxu0 %v3928_v50 }
 0x5a0   : > { %3774 = vmatpush3.msra.mxu0 %v2970_v32  ;;  %3791 = vmatpush3.msra.mxu1 %v3067_v39 }
 0x5a1   : > { %3775 = vmatprep.subr.mxu0 %v3928_v50  ;;  %3792 = vmatprep.subr.mxu1 %v3928_v50 }
 0x5a2   : > { %3776 = vmatpush3.msra.mxu0 %v2969_v33  ;;  %3793 = vmatpush3.msra.mxu1 %v3066_v40 }
 0x5a3   : > { %3777 = vmatprep.subr.mxu0 %v3928_v50  ;;  %3794 = vmatprep.subr.mxu1 %v3928_v50 }
 0x5a4   : > { %3778 = vmatpush3.msra.mxu0 %v2968_v34  ;;  %3795 = vmatpush3.msra.mxu1 %v3065_v3 }
 0x5a5   : > { %3779 = vmatprep.subr.mxu0 %v3928_v50  ;;  %3796 = vmatprep.subr.mxu1 %v3928_v50 }
 0x5a6   : > { %3780 = vmatpush3.msra.mxu0 %v2967_v35  ;;  %3797 = vmatpush3.msra.mxu1 %v3064_v18 }
 0x5a7   : > { %3781 = vmatprep.subr.mxu0 %v3928_v50  ;;  %3798 = vmatprep.subr.mxu1 %v3928_v50 }
 0x5a8   : > { %3782 = vmatpush3.msra.mxu0 %v2966_v36  ;;  %3799 = vmatpush3.msra.mxu1 %v3063_v24 }
 0x5a9   : > { %3783 = vmatprep.subr.mxu0 %v3928_v50  ;;  %3800 = vmatprep.subr.mxu1 %v3928_v50 }
 0x5aa   : > { %3784 = vmatpush3.msra.mxu0 %v2965_v37  ;;  %3801 = vmatpush3.msra.mxu1 %v3062_v41 }
 0x5ab   : > { %3785 = vmatprep.subr.mxu0 %v3928_v50  ;;  %3802 = vmatprep.subr.mxu1 %v3928_v50 }
 0x5ac   : > { %3786 = vmatpush3.msra.mxu0 %v2964_v38  ;;  %3803 = vmatpush3.msra.mxu1 %v3061_v42 }
 0x5ad   : > { %3804 = vmatprep.subr.mxu1 %v3928_v50 }
 0x5ae   : > { %3805 = vmatpush3.msra.mxu1 %v3060_v43 }
 0x5af   : > { %3806 = vmatprep.subr.mxu1 %v3928_v50 }
 0x5b0   : > { %3807 = vmatpush3.msra.mxu1 %v3059_v44 }
 0x5b1   : > { %3808 = vmatprep.subr.mxu1 %v3928_v50 }
 0x5b2   : > { %3809 = vmatpush3.msra.mxu1 %v3058_v45 }
 0x5b3   : > { %3810 = vmatprep.subr.mxu1 %v3928_v50 }
 0x5b4   : > { %3811 = vmatpush3.msra.mxu1 %v3057_v46 }
 0x5b5   : > { %3812 = vmatprep.subr.mxu1 %v3928_v50 }
 0x5b6   : > { %3813 = vmatpush3.msra.mxu1 %v3056_v48 }
 0x5b7   : > { %3814 = vmatprep.subr.mxu1 %v3928_v50 }
 0x5b8   : > { %3815 = vmatpush3.msra.mxu1 %v3055_v51 }
 0x5b9   : > { %3816 = vmatprep.subr.mxu1 %v3928_v50 }
 0x5ba   : > { %3817 = vmatpush3.msra.mxu1 %v3054_v4 }
 0x5bb   : > { %3818 = vmatprep.subr.mxu1 %v3928_v50 }
 0x5bc   : > { %3819 = vmatpush3.msra.mxu1 %v3053_v5 }
 0x5bd   : > { %3820 = vmatprep.subr.mxu1 %v3928_v50  ;;  %v3068_v50 = vld [vmem:[%s5644_s14] sm:$0x1] }
 0x5be   : > { %3821 = vmatpush3.msra.mxu1 %v3052_v6 }
 0x634   : > { %v2626_v52 = vpop.f32.mrf.mxu1  ;;  %v2699_v53 = vpop.f32.mrf.mxu0 }
 0x635   : > { %v2700_v59 = vadd.f32 %v2699_v53, %v2626_v52 }
 0x636   : > { %v3662_v54 = vpop.f32.mrf.mxu1  ;;  %v3685_v55 = vpop.f32.mrf.mxu0 }
 0x649   : > { %v2784_v49 = vpop.f32.mrf.mxu1  ;;  %v2870_v56 = vpop.f32.mrf.mxu0 }
 0x64a   : > { %v2788_v60 = vadd.f32 %v2784_v49, %v2700_v59 }
 0x64b   : > { %v3708_v57 = vpop.f32.mrf.mxu1  ;;  %v3731_v47 = vpop.f32.mrf.mxu0 }
 0x64c   : > { %v2874_v58 = vadd.f32 %v2870_v56, %v2788_v60 }
 0x65e   : > { %v2956_v61 = vpop.f32.mrf.mxu1 }
 0x65f   : > { %v2960_v63 = vadd.f32 %v2956_v61, %v2874_v58 }
 0x660   : > { %v3754_v0 = vpop.f32.mrf.mxu1 }
 0x661   : > { %v2962_v1 = vadd.f32 %v2961_v62, %v2960_v63 }
 0x663   : > { %v2963_v2 = vmax.f32 %v2962_v1, 0.0 }
 0x665   : > { %3788 = vmatmul.mubr.f32.vlgmr.msra.gmra.mxu0 %v2963_v2 }
 0x725   : > { %v3047_v8 = vpop.f32.mrf.mxu0 }
 0x726   : > { %v3048_v9 = vadd.f32 %v3047_v8, %v2980_v7 }
 0x727   : > { %v3789_v10 = vpop.f32.mrf.mxu0 }
 0x728   : > { %v3051_v11 = vmax.f32 %v3048_v9, 0.0 }
 0x72a   : > { %3823 = vmatmul.mubr.f32.vlgmr.msra.gmra.mxu1 %v3051_v11 }
 0x7ea   : > { %v3135_v12 = vpop.f32.mrf.mxu1 }
 0x7eb   : > { %v3136_v13 = vadd.f32 %v3135_v12, %v3068_v50 }
 0x7ec   : > { %v3824_v14 = vpop.f32.mrf.mxu1 }
 0x7ed   : > { %3139 = vst [vmem:[%s486_s27] sm:$0x1] %v3136_v13 }
 0x7ee   : > { %3879 = shalt.err (!%p3876_p3)
}
 0x7ef   : > { %s3880_s21 = scalar_lea.hbm %s5595_s25, 16  ;;  %s3884_s27 = scalar_lea.hbm %s5645_s15, 32 }
 0x7f0   : > { %p3881_p4 = scmp.ne.s32.totalorder %s5595_s25, %s3880_s21  ;;  %p3885_p9 = scmp.lt.s32.totalorder %s5595_s25, %s5645_s15 }
 0x7f1   : > { %p3886_p10 = scmp.lt.s32.totalorder %s3884_s27, %s3880_s21 }
 0x7f2   : > { %p3882_p7 = pnand %p3881_p4, %p4049_p5 }
 0x7f3   : > { %p3887_p11 = por %p3886_p10, %p3885_p9 }
 0x7f4   : > { %p3883_p8 = pneg %p3882_p7 }
 0x7f6   : > { %p3888_p12 = pnand %p3887_p11, %p3883_p8 }
 0x7f8   : > { %3891 = shalt.err (!%p3888_p12)
}
 0x7f9   : > { %3825 = dma.vmem_to_hbm [thread:$0]  (%p4049_p5), %s3154_s24, 16, %s5595_s25, %s3141_s30  }
 0x7fa PF: > { %s5660_s17 = sld [smem:[#allocation9_spill]] }
 0x7fb   : > { %s5661_s18 = sld [smem:[#allocation7_spill]] }
 0x800   : > { %p3831_p13 = scmp.ge.s32.totalorder %s5660_s17, 2 }
 0x801   : > { %s3165_s26 = sand.u32 1, %s5661_s18  }
 0x802   : > { %p3828_p0 = pnand %p3831_p13, %p4053_p6  ;;  %s3166_s23 = scalar_lea.sflag [#allocation5], %s3165_s26 }
 0x804   : > { %p3829_p1 = pneg %p3828_p0 }
 0x806   : > { %3909 = dma.done.wait (%p3829_p1), %s3166_s23, 16  }
 0x807   : > { %3911 = vsyncadd (%p3829_p1), %s3166_s23, 4294967280  ;;  %s5663_s21 = sld [smem:[#allocation10_spill]]  ;;  %s5666_s18 = smov %s3918_s19 }
 0x808   : > { %s5664_s20 = sld [smem:[#allocation8_spill]] }
 0x809   : > { %s5665_s27 = sld [smem:[#allocation11_spill]] }
 0x80d   : > { %p25_p2 = scmp.ge.s32.totalorder %s5663_s21, 4  }
 0x80e   : > { %s5667_s19 = smov %s5664_s20 }
 0x80f   : > { %s5668_s20 = smov %s5665_s27  ;;  %27 = sbr.rel (!%p25_p2) target bundleno = 3 (0x3), region = 131 }
 0x814   :  { %3170 = vsyncpa [#allocation5], 1 }
 0x815   :  { %3172 = vsyncpa [#allocation5 + $0x1], 1 }

</bundles_post_ra>
